<compile_context>
chip_gen: v7x
topology: tpu7x:2x2x1
jax: 0.10.0
libtpu: 0.0.40
codegen_flags: <defaults>
</compile_context>

<pallas_src>
import functools

import jax
import jax.numpy as jnp
import numpy as np
from jax.experimental import pallas as pl
from jax.experimental.pallas import tpu as pltpu

EPS = 1e-5                      # nn.BatchNorm2d default eps (train-mode batch stats)
LANES = 128                     # TPU lane width; pad conv output channels to this
TILE_M_MAX = 4096               # max rows per tile (multiple of 8)
VMEM_BUDGET = 16 * 1024 * 1024  # target pipelined working set per pallas_call
VMEM_LIMIT = 32 * 1024 * 1024   # scoped VMEM limit handed to Mosaic


def _round_up(a, b):
    return (a + b - 1) // b * b


# ----------------------------------------------------------------------------
# Pallas kernels
# ----------------------------------------------------------------------------
def conv_bn_relu_kernel(slab_ref, w_ref, g_ref, b_ref, o_ref,
                        sum_sc, sq_sc, scale_sc, shift_sc, *, inv_m):
    """Fused conv (im2col matmul) + train-mode BatchNorm + ReLU.

    Grid = (2, M_tiles).  Pass 0 accumulates per-channel sum / sumsq into VMEM
    scratch; pass 1 computes scale/shift once (tile 0), then recomputes each
    tile matmul and writes the normalized, ReLU'd, lane-dense output tile.
    """
    s = pl.program_id(0)   # pass: 0 = statistics, 1 = normalize + store
    i = pl.program_id(1)   # M tile index

    # Single deep-contraction matmul per tile: [TM, K*Cin] x [K*Cin, Cpad].
    # f32 inputs, f32 accumulation (numerically faithful to the PyTorch conv).
    acc = jnp.dot(slab_ref[...], w_ref[...],
                  preferred_element_type=jnp.float32)

    @pl.when((s == 0) & (i == 0))
    def _():
        sum_sc[...] = jnp.zeros_like(sum_sc)
        sq_sc[...] = jnp.zeros_like(sq_sc)

    @pl.when(s == 0)
    def _():
        sum_sc[...] += jnp.sum(acc, axis=0, keepdims=True)
        sq_sc[...] += jnp.sum(acc * acc, axis=0, keepdims=True)

    @pl.when((s == 1) & (i == 0))
    def _():
        # Hoisted: scale/shift computed once, reused by every pass-1 tile.
        mean = sum_sc[...] * inv_m
        var = sq_sc[...] * inv_m - mean * mean      # biased var (PyTorch train)
        scale = g_ref[...] * jax.lax.rsqrt(var + EPS)
        scale_sc[...] = scale
        shift_sc[...] = b_ref[...] - mean * scale

    @pl.when(s == 1)
    def _():
        o_ref[...] = jnp.maximum(acc * scale_sc[...] + shift_sc[...], 0.0)


def maxpool_kernel(t_ref, o_ref):
    """Max over the 9 pooling taps; tiled over rows, channels unpadded."""
    m = t_ref[0]
    for k in range(1, 9):   # static unroll
        m = jnp.maximum(m, t_ref[k])
    o_ref[...] = m


# ----------------------------------------------------------------------------
# Glue: im2col, weight layout, tile sizing, pallas_call wrappers
# ----------------------------------------------------------------------------
def _im2col(x_nhwc, ksize, stride, pad):
    """[M, K*Cin] f32 slab (taps flattened into the contraction dim)."""
    N, H, W, C = x_nhwc.shape
    Ho = (H + 2 * pad - ksize) // stride + 1
    Wo = (W + 2 * pad - ksize) // stride + 1
    if pad:
        x_nhwc = jnp.pad(x_nhwc, ((0, 0), (pad, pad), (pad, pad), (0, 0)))
    cols = []
    for kh in range(ksize):
        for kw in range(ksize):
            cols.append(x_nhwc[:,
                               kh:kh + (Ho - 1) * stride + 1:stride,
                               kw:kw + (Wo - 1) * stride + 1:stride, :])
    slab = jnp.stack(cols, axis=3).reshape(N * Ho * Wo, ksize * ksize * C)
    return slab.astype(jnp.float32), Ho, Wo


def _weight_matrix(w_oihw, cpad):
    """PyTorch (Cout, Cin, KH, KW) -> [KH*KW*Cin, Cout_pad] (lane-padded)."""
    Cout, Cin, KH, KW = w_oihw.shape
    wm = jnp.transpose(w_oihw, (2, 3, 1, 0)).reshape(KH * KW * Cin, Cout)
    return jnp.pad(wm, ((0, 0), (0, cpad - Cout))).astype(jnp.float32)


def _pick_tile_m(M, KC, cpad):
    """Largest tm (multiple of 8, <= TILE_M_MAX) whose double-buffered
    working set (VMEM lane-padded layout sizes) fits VMEM_BUDGET."""
    kc_lanes = _round_up(KC, LANES)                 # slab tile lane padding
    per_row = (2 * kc_lanes + 2 * cpad) * 4         # 2x slab + 2x out (f32)
    resident = 2 * _round_up(KC, 8) * cpad * 4 + 16 * cpad * 4  # weights + params/scratch
    tm = (VMEM_BUDGET - resident) // per_row
    tm = max(8, (min(TILE_M_MAX, tm) // 8) * 8)
    return min(tm, _round_up(M, 8))


def conv_bn_relu(x_nhwc, w_oihw, gamma, beta, *, ksize, stride, pad):
    """create_conv_block(conv -> BN(train stats) -> ReLU) as one pallas_call."""
    N, H, W, Cin = x_nhwc.shape
    Cout = w_oihw.shape[0]
    cpad = _round_up(Cout, LANES)

    slab, Ho, Wo = _im2col(x_nhwc, ksize, stride, pad)
    M, KC = slab.shape
    tm = _pick_tile_m(M, KC, cpad)
    m_pad = _round_up(M, tm)
    if m_pad != M:                                  # zero rows: no effect on BN stats
        slab = jnp.pad(slab, ((0, m_pad - M), (0, 0)))
    mt = m_pad // tm

    wm = _weight_matrix(w_oihw, cpad)
    g2 = jnp.pad(gamma.astype(jnp.float32).reshape(1, Cout),
                 ((0, 0), (0, cpad - Cout)))
    b2 = jnp.pad(beta.astype(jnp.float32).reshape(1, Cout),
                 ((0, 0), (0, cpad - Cout)))

    kernel = functools.partial(conv_bn_relu_kernel, inv_m=1.0 / M)
    out = pl.pallas_call(
        kernel,
        out_shape=jax.ShapeDtypeStruct((m_pad, cpad), jnp.float32),
        grid=(2, mt),
        in_specs=[
            pl.BlockSpec((tm, KC), lambda s, i: (i, 0)),     # im2col tile
            pl.BlockSpec((KC, cpad), lambda s, i: (0, 0)),   # weights (resident)
            pl.BlockSpec((1, cpad), lambda s, i: (0, 0)),    # gamma
            pl.BlockSpec((1, cpad), lambda s, i: (0, 0)),    # beta
        ],
        # i * s  ->  stays on block 0 during the stats pass (no writeback),
        # walks the tiles during the normalize pass.  Requires the pass axis
        # to remain the LEADING grid axis.
        out_specs=pl.BlockSpec((tm, cpad), lambda s, i: (i * s, 0)),
        scratch_shapes=[pltpu.VMEM((1, cpad), jnp.float32),   # sum
                        pltpu.VMEM((1, cpad), jnp.float32),   # sum of squares
                        pltpu.VMEM((1, cpad), jnp.float32),   # BN scale
                        pltpu.VMEM((1, cpad), jnp.float32)],  # BN shift
        compiler_params=pltpu.CompilerParams(
            dimension_semantics=("arbitrary", "arbitrary"),
            vmem_limit_bytes=VMEM_LIMIT),
    )(slab, wm, g2, b2)

    return out[:M, :Cout].reshape(N, Ho, Wo, Cout)


def maxpool_3x3_s2(x_nhwc):
    """nn.MaxPool2d(kernel_size=3, stride=2, padding=1) on NHWC data."""
    N, H, W, C = x_nhwc.shape
    Ho = (H + 2 - 3) // 2 + 1
    Wo = (W + 2 - 3) // 2 + 1
    xp = jnp.pad(x_nhwc, ((0, 0), (1, 1), (1, 1), (0, 0)),
                 constant_values=-jnp.inf)           # PyTorch pads maxpool with -inf
    taps = []
    for kh in range(3):
        for kw in range(3):
            taps.append(xp[:, kh:kh + (Ho - 1) * 2 + 1:2,
                           kw:kw + (Wo - 1) * 2 + 1:2, :])
    M = N * Ho * Wo
    # Taps kept at the REAL channel count (no per-tap 128-lane padding) ->
    # ~8x less HBM traffic on this branch for 16-channel activations.
    t = jnp.stack(taps, axis=0).reshape(9, M, C).astype(jnp.float32)

    c_lanes = _round_up(C, LANES)                    # VMEM layout padding
    per_row = (2 * 9 * c_lanes + 2 * c_lanes) * 4
    tm = max(8, (min(TILE_M_MAX, VMEM_BUDGET // per_row) // 8) * 8)
    tm = min(tm, _round_up(M, 8))
    m_pad = _round_up(M, tm)
    if m_pad != M:
        t = jnp.pad(t, ((0, 0), (0, m_pad - M), (0, 0)))
    mt = m_pad // tm

    out = pl.pallas_call(
        maxpool_kernel,
        out_shape=jax.ShapeDtypeStruct((m_pad, C), jnp.float32),
        grid=(mt,),
        in_specs=[pl.BlockSpec((9, tm, C), lambda i: (0, i, 0))],
        out_specs=pl.BlockSpec((tm, C), lambda i: (i, 0)),
        compiler_params=pltpu.CompilerParams(
            dimension_semantics=("parallel",),
            vmem_limit_bytes=VMEM_LIMIT),
    )(t)
    return out[:M, :].reshape(N, Ho, Wo, C)


# ----------------------------------------------------------------------------
# StemBlock forward (Pallas)
# ----------------------------------------------------------------------------
def stem_block_forward(x_nchw, p):
    x = jnp.transpose(x_nchw, (0, 2, 3, 1)).astype(jnp.float32)   # NCHW -> NHWC
    # conv_1: 3x3 s2
    x1 = conv_bn_relu(x, p['w1'], p['g1'], p['b1'], ksize=3, stride=2, pad=1)
    # pool branch
    xp = maxpool_3x3_s2(x1)
    # conv_2 branch: 1x1 s1 then 3x3 s2
    x2 = conv_bn_relu(x1, p['w2a'], p['g2a'], p['b2a'], ksize=1, stride=1, pad=0)
    x2 = conv_bn_relu(x2, p['w2b'], p['g2b'], p['b2b'], ksize=3, stride=2, pad=1)
    # concat along channels (torch dim=1 == NHWC last axis), then conv_3
    x3 = jnp.concatenate([xp, x2], axis=-1)
    out = conv_bn_relu(x3, p['w3'], p['g3'], p['b3'], ksize=3, stride=1, pad=1)
    return jnp.transpose(out, (0, 3, 1, 2))                       # back to NCHW


# ----------------------------------------------------------------------------
# Pure-JAX reference (for validation)
# ----------------------------------------------------------------------------
def _conv_ref(x, w_oihw, stride, pad):
    w = jnp.transpose(w_oihw, (2, 3, 1, 0))   # OIHW -> HWIO
    return jax.lax.conv_general_dilated(
        x, w, (stride, stride), ((pad, pad), (pad, pad)),
        dimension_numbers=("NHWC", "HWIO", "NHWC"),
        precision=jax.lax.Precision.HIGHEST)


def _bn_relu_ref(x, gamma, beta):
    mean = x.mean(axis=(0, 1, 2), keepdims=True)
    var = ((x - mean) ** 2).mean(axis=(0, 1, 2), keepdims=True)
    y = (x - mean) * jax.lax.rsqrt(var + EPS) * gamma.reshape(1, 1, 1, -1) \
        + beta.reshape(1, 1, 1, -1)
    return jnp.maximum(y, 0.0)


def stem_block_ref(x_nchw, p):
    x = jnp.transpose(x_nchw, (0, 2, 3, 1)).astype(jnp.float32)
    x1 = _bn_relu_ref(_conv_ref(x, p['w1'], 2, 1), p['g1'], p['b1'])
    xp = jax.lax.reduce_window(x1, -jnp.inf, jax.lax.max,
                               (1, 3, 3, 1), (1, 2, 2, 1),
                               ((0, 0), (1, 1), (1, 1), (0, 0)))
    x2 = _bn_relu_ref(_conv_ref(x1, p['w2a'], 1, 0), p['g2a'], p['b2a'])
    x2 = _bn_relu_ref(_conv_ref(x2, p['w2b'], 2, 1), p['g2b'], p['b2b'])
    x3 = jnp.concatenate([xp, x2], axis=-1)
    out = _bn_relu_ref(_conv_ref(x3, p['w3'], 1, 1), p['g3'], p['b3'])
    return jnp.transpose(out, (0, 3, 1, 2))


# ----------------------------------------------------------------------------
# Deterministic parameter init (shapes follow the torch module __init__)
# ----------------------------------------------------------------------------
def init_params(key, out_ch):
    ks = jax.random.split(key, 8)

    def bn(k, c):
        k1, k2 = jax.random.split(k)
        return (1.0 + 0.1 * jax.random.normal(k1, (c,), jnp.float32),
                0.1 * jax.random.normal(k2, (c,), jnp.float32))

    p = {}
    p['w1'] = 0.1 * jax.random.normal(ks[0], (out_ch, 3, 3, 3), jnp.float32)
    p['g1'], p['b1'] = bn(ks[1], out_ch)
    p['w2a'] = 0.1 * jax.random.normal(ks[2], (out_ch, out_ch, 1, 1), jnp.float32)
    p['g2a'], p['b2a'] = bn(ks[3], out_ch)
    p['w2b'] = 0.1 * jax.random.normal(ks[4], (out_ch, out_ch, 3, 3), jnp.float32)
    p['g2b'], p['b2b'] = bn(ks[5], out_ch)
    p['w3'] = 0.1 * jax.random.normal(ks[6], (out_ch, 2 * out_ch, 3, 3), jnp.float32)
    p['g3'], p['b3'] = bn(ks[7], out_ch)
    return p


# ----------------------------------------------------------------------------
if __name__ == "__main__":
    key = jax.random.PRNGKey(0)
    kx, kp = jax.random.split(key)

    out_ch = 16
    x = jax.random.normal(kx, (2, 3, 16, 16), jnp.float32)   # NCHW image
    params = init_params(kp, out_ch)

    fwd = jax.jit(stem_block_forward)
    out = fwd(x, params)
    jax.block_until_ready(out)

    ref = stem_block_ref(x, params)
    # f32 compute throughout; tolerance left with headroom for MXU rounding
    # of f32 matmuls across three stacked conv+BN stages.
    np.testing.assert_allclose(np.asarray(out), np.asarray(ref),
                               rtol=3e-2, atol=3e-2)

    assert out.shape == (2, out_ch, 4, 4)
    print("KERNEL_OK")
</pallas_src>

<mosaic_0001>
module attributes {stable_mosaic.version = 11 : i64} {
  func.func @conv_bn_relu_kernel(%arg0: i32, %arg1: i32, %arg2: memref<128x27xf32, #tpu.memory_space<vmem>>, %arg3: memref<27x128xf32, #tpu.memory_space<vmem>>, %arg4: memref<1x128xf32, #tpu.memory_space<vmem>>, %arg5: memref<1x128xf32, #tpu.memory_space<vmem>>, %arg6: memref<128x128xf32, #tpu.memory_space<vmem>>, %arg7: memref<1x128xf32, #tpu.memory_space<vmem>>, %arg8: memref<1x128xf32, #tpu.memory_space<vmem>>, %arg9: memref<1x128xf32, #tpu.memory_space<vmem>>, %arg10: memref<1x128xf32, #tpu.memory_space<vmem>>) attributes {dimension_semantics = [#tpu.dimension_semantics<arbitrary>, #tpu.dimension_semantics<arbitrary>], iteration_bounds = array<i64: 2, 1>, scalar_prefetch = 0 : i64, scratch_operands = 4 : i64, tpu.core_type = #tpu.core_type<tc>, window_params = [{transform_indices = @transform_0, window_bounds = array<i64: 128, 27>}, {pipeline_mode = #tpu.pipeline_mode<synchronous>, transform_indices = @transform_1, window_bounds = array<i64: 27, 128>}, {pipeline_mode = #tpu.pipeline_mode<synchronous>, transform_indices = @transform_2, window_bounds = array<i64: 1, 128>}, {pipeline_mode = #tpu.pipeline_mode<synchronous>, transform_indices = @transform_3, window_bounds = array<i64: 1, 128>}, {transform_indices = @transform_4, window_bounds = array<i64: 128, 128>}]} {
    %c0 = arith.constant 0 : index
    %c0_0 = arith.constant 0 : index
    %0 = vector.load %arg2[%c0, %c0_0] : memref<128x27xf32, #tpu.memory_space<vmem>>, vector<128x27xf32>
    %c0_1 = arith.constant 0 : index
    %c0_2 = arith.constant 0 : index
    %1 = vector.load %arg3[%c0_1, %c0_2] : memref<27x128xf32, #tpu.memory_space<vmem>>, vector<27x128xf32>
    %cst = arith.constant dense<0.000000e+00> : vector<128x128xf32>
    %2 = tpu.matmul %0, %1, %cst {dimension_numbers = #tpu.dot_dimension_numbers<[1], [0], [0], [1], [0, 0, 1, 1], [], []>} : vector<128x27xf32>, vector<27x128xf32>, vector<128x128xf32> -> vector<128x128xf32>
    %c0_i32 = arith.constant 0 : i32
    %3 = arith.cmpi eq, %arg0, %c0_i32 : i32
    %c0_i32_3 = arith.constant 0 : i32
    %4 = arith.cmpi eq, %arg1, %c0_i32_3 : i32
    %5 = arith.andi %3, %4 : i1
    %6 = arith.extui %5 : i1 to i32
    %c0_i32_4 = arith.constant 0 : i32
    %7 = arith.cmpi ne, %6, %c0_i32_4 : i32
    scf.if %7 {
      %cst_11 = arith.constant 0.000000e+00 : f32
      %19 = vector.broadcast %cst_11 : f32 to vector<1x128xf32>
      %c0_12 = arith.constant 0 : index
      %c0_13 = arith.constant 0 : index
      %20 = vector.load %arg7[%c0_12, %c0_13] : memref<1x128xf32, #tpu.memory_space<vmem>>, vector<1x128xf32>
      tpu.vector_store %arg7[%c0_12, %c0_13], %19 {strides = array<i32>} : memref<1x128xf32, #tpu.memory_space<vmem>>, vector<1x128xf32>,
      %cst_14 = arith.constant 0.000000e+00 : f32
      %21 = vector.broadcast %cst_14 : f32 to vector<1x128xf32>
      %c0_15 = arith.constant 0 : index
      %c0_16 = arith.constant 0 : index
      %22 = vector.load %arg8[%c0_15, %c0_16] : memref<1x128xf32, #tpu.memory_space<vmem>>, vector<1x128xf32>
      tpu.vector_store %arg8[%c0_15, %c0_16], %21 {strides = array<i32>} : memref<1x128xf32, #tpu.memory_space<vmem>>, vector<1x128xf32>,
    } else {
    }
    %c0_i32_5 = arith.constant 0 : i32
    %8 = arith.cmpi eq, %arg0, %c0_i32_5 : i32
    %9 = arith.extui %8 : i1 to i32
    %c0_i32_6 = arith.constant 0 : i32
    %10 = arith.cmpi ne, %9, %c0_i32_6 : i32
    scf.if %10 {
      %c0_11 = arith.constant 0 : index
      %c0_12 = arith.constant 0 : index
      %19 = vector.load %arg7[%c0_11, %c0_12] : memref<1x128xf32, #tpu.memory_space<vmem>>, vector<1x128xf32>
      %cst_13 = arith.constant dense<0.000000e+00> : vector<128xf32>
      %20 = vector.multi_reduction <add>, %2, %cst_13 [0] : vector<128x128xf32> to vector<128xf32>
      %21 = vector.shape_cast %20 : vector<128xf32> to vector<1x128xf32>
      %22 = arith.addf %19, %21 : vector<1x128xf32>
      %c0_14 = arith.constant 0 : index
      %c0_15 = arith.constant 0 : index
      %23 = vector.load %arg7[%c0_14, %c0_15] : memref<1x128xf32, #tpu.memory_space<vmem>>, vector<1x128xf32>
      tpu.vector_store %arg7[%c0_14, %c0_15], %22 {strides = array<i32>} : memref<1x128xf32, #tpu.memory_space<vmem>>, vector<1x128xf32>,
      %c0_16 = arith.constant 0 : index
      %c0_17 = arith.constant 0 : index
      %24 = vector.load %arg8[%c0_16, %c0_17] : memref<1x128xf32, #tpu.memory_space<vmem>>, vector<1x128xf32>
      %25 = arith.mulf %2, %2 : vector<128x128xf32>
      %cst_18 = arith.constant dense<0.000000e+00> : vector<128xf32>
      %26 = vector.multi_reduction <add>, %25, %cst_18 [0] : vector<128x128xf32> to vector<128xf32>
      %27 = vector.shape_cast %26 : vector<128xf32> to vector<1x128xf32>
      %28 = arith.addf %24, %27 : vector<1x128xf32>
      %c0_19 = arith.constant 0 : index
      %c0_20 = arith.constant 0 : index
      %29 = vector.load %arg8[%c0_19, %c0_20] : memref<1x128xf32, #tpu.memory_space<vmem>>, vector<1x128xf32>
      tpu.vector_store %arg8[%c0_19, %c0_20], %28 {strides = array<i32>} : memref<1x128xf32, #tpu.memory_space<vmem>>, vector<1x128xf32>,
    } else {
    }
    %c1_i32 = arith.constant 1 : i32
    %11 = arith.cmpi eq, %arg0, %c1_i32 : i32
    %c0_i32_7 = arith.constant 0 : i32
    %12 = arith.cmpi eq, %arg1, %c0_i32_7 : i32
    %13 = arith.andi %11, %12 : i1
    %14 = arith.extui %13 : i1 to i32
    %c0_i32_8 = arith.constant 0 : i32
    %15 = arith.cmpi ne, %14, %c0_i32_8 : i32
    scf.if %15 {
      %c0_11 = arith.constant 0 : index
      %c0_12 = arith.constant 0 : index
      %19 = vector.load %arg7[%c0_11, %c0_12] : memref<1x128xf32, #tpu.memory_space<vmem>>, vector<1x128xf32>
      %cst_13 = arith.constant 7.812500e-03 : f32
      %20 = vector.broadcast %cst_13 : f32 to vector<1x128xf32>
      %21 = arith.mulf %19, %20 : vector<1x128xf32>
      %c0_14 = arith.constant 0 : index
      %c0_15 = arith.constant 0 : index
      %22 = vector.load %arg8[%c0_14, %c0_15] : memref<1x128xf32, #tpu.memory_space<vmem>>, vector<1x128xf32>
      %cst_16 = arith.constant 7.812500e-03 : f32
      %23 = vector.broadcast %cst_16 : f32 to vector<1x128xf32>
      %24 = arith.mulf %22, %23 : vector<1x128xf32>
      %25 = arith.mulf %21, %21 : vector<1x128xf32>
      %26 = arith.subf %24, %25 : vector<1x128xf32>
      %c0_17 = arith.constant 0 : index
      %c0_18 = arith.constant 0 : index
      %27 = vector.load %arg4[%c0_17, %c0_18] : memref<1x128xf32, #tpu.memory_space<vmem>>, vector<1x128xf32>
      %cst_19 = arith.constant 9.99999974E-6 : f32
      %28 = vector.broadcast %cst_19 : f32 to vector<1x128xf32>
      %29 = arith.addf %26, %28 : vector<1x128xf32>
      %30 = math.rsqrt %29 : vector<1x128xf32>
      %31 = arith.mulf %27, %30 : vector<1x128xf32>
      %c0_20 = arith.constant 0 : index
      %c0_21 = arith.constant 0 : index
      %32 = vector.load %arg9[%c0_20, %c0_21] : memref<1x128xf32, #tpu.memory_space<vmem>>, vector<1x128xf32>
      tpu.vector_store %arg9[%c0_20, %c0_21], %31 {strides = array<i32>} : memref<1x128xf32, #tpu.memory_space<vmem>>, vector<1x128xf32>,
      %c0_22 = arith.constant 0 : index
      %c0_23 = arith.constant 0 : index
      %33 = vector.load %arg5[%c0_22, %c0_23] : memref<1x128xf32, #tpu.memory_space<vmem>>, vector<1x128xf32>
      %34 = arith.mulf %21, %31 : vector<1x128xf32>
      %35 = arith.subf %33, %34 : vector<1x128xf32>
      %c0_24 = arith.constant 0 : index
      %c0_25 = arith.constant 0 : index
      %36 = vector.load %arg10[%c0_24, %c0_25] : memref<1x128xf32, #tpu.memory_space<vmem>>, vector<1x128xf32>
      tpu.vector_store %arg10[%c0_24, %c0_25], %35 {strides = array<i32>} : memref<1x128xf32, #tpu.memory_space<vmem>>, vector<1x128xf32>,
    } else {
    }
    %c1_i32_9 = arith.constant 1 : i32
    %16 = arith.cmpi eq, %arg0, %c1_i32_9 : i32
    %17 = arith.extui %16 : i1 to i32
    %c0_i32_10 = arith.constant 0 : i32
    %18 = arith.cmpi ne, %17, %c0_i32_10 : i32
    scf.if %18 {
      %c0_11 = arith.constant 0 : index
      %c0_12 = arith.constant 0 : index
      %19 = vector.load %arg9[%c0_11, %c0_12] : memref<1x128xf32, #tpu.memory_space<vmem>>, vector<1x128xf32>
      %20 = vector.broadcast %19 : vector<1x128xf32> to vector<128x128xf32>
      %21 = arith.mulf %2, %20 : vector<128x128xf32>
      %c0_13 = arith.constant 0 : index
      %c0_14 = arith.constant 0 : index
      %22 = vector.load %arg10[%c0_13, %c0_14] : memref<1x128xf32, #tpu.memory_space<vmem>>, vector<1x128xf32>
      %23 = vector.broadcast %22 : vector<1x128xf32> to vector<128x128xf32>
      %24 = arith.addf %21, %23 : vector<128x128xf32>
      %cst_15 = arith.constant 0.000000e+00 : f32
      %25 = vector.broadcast %cst_15 : f32 to vector<128x128xf32>
      %26 = arith.maximumf %24, %25 : vector<128x128xf32>
      %c0_16 = arith.constant 0 : index
      %c0_17 = arith.constant 0 : index
      %27 = vector.load %arg6[%c0_16, %c0_17] : memref<128x128xf32, #tpu.memory_space<vmem>>, vector<128x128xf32>
      tpu.vector_store %arg6[%c0_16, %c0_17], %26 {strides = array<i32>} : memref<128x128xf32, #tpu.memory_space<vmem>>, vector<128x128xf32>,
    } else {
    }
    return
  }
  func.func @transform_0(%arg0: i32, %arg1: i32) -> (i32, i32) {
    %c0_i32 = arith.constant 0 : i32
    %c0_i32_0 = arith.constant 0 : i32
    return %arg1, %c0_i32 : i32, i32
  }
  func.func @transform_1(%arg0: i32, %arg1: i32) -> (i32, i32) {
    %c0_i32 = arith.constant 0 : i32
    %c0_i32_0 = arith.constant 0 : i32
    %c0_i32_1 = arith.constant 0 : i32
    return %c0_i32, %c0_i32_0 : i32, i32
  }
  func.func @transform_2(%arg0: i32, %arg1: i32) -> (i32, i32) {
    %c0_i32 = arith.constant 0 : i32
    %c0_i32_0 = arith.constant 0 : i32
    %c0_i32_1 = arith.constant 0 : i32
    return %c0_i32, %c0_i32_0 : i32, i32
  }
  func.func @transform_3(%arg0: i32, %arg1: i32) -> (i32, i32) {
    %c0_i32 = arith.constant 0 : i32
    %c0_i32_0 = arith.constant 0 : i32
    %c0_i32_1 = arith.constant 0 : i32
    return %c0_i32, %c0_i32_0 : i32, i32
  }
  func.func @transform_4(%arg0: i32, %arg1: i32) -> (i32, i32) {
    %0 = arith.muli %arg1, %arg0 : i32
    %c0_i32 = arith.constant 0 : i32
    %c0_i32_0 = arith.constant 0 : i32
    return %0, %c0_i32 : i32, i32
  }
}

module attributes {stable_mosaic.version = 11 : i64} {
  func.func @maxpool_kernel(%arg0: i32, %arg1: memref<9x32x16xf32, #tpu.memory_space<vmem>>, %arg2: memref<32x16xf32, #tpu.memory_space<vmem>>) attributes {dimension_semantics = [#tpu.dimension_semantics<parallel>], iteration_bounds = array<i64: 1>, scalar_prefetch = 0 : i64, scratch_operands = 0 : i64, tpu.core_type = #tpu.core_type<tc>, window_params = [{transform_indices = @transform_0, window_bounds = array<i64: 9, 32, 16>}, {transform_indices = @transform_1, window_bounds = array<i64: 32, 16>}]} {
    %c0 = arith.constant 0 : index
    %c0_0 = arith.constant 0 : index
    %c0_1 = arith.constant 0 : index
    %0 = vector.load %arg1[%c0, %c0_0, %c0_1] : memref<9x32x16xf32, #tpu.memory_space<vmem>>, vector<1x32x16xf32>
    %1 = vector.shape_cast %0 : vector<1x32x16xf32> to vector<32x16xf32>
    %c1 = arith.constant 1 : index
    %c0_2 = arith.constant 0 : index
    %c0_3 = arith.constant 0 : index
    %2 = vector.load %arg1[%c1, %c0_2, %c0_3] : memref<9x32x16xf32, #tpu.memory_space<vmem>>, vector<1x32x16xf32>
    %3 = vector.shape_cast %2 : vector<1x32x16xf32> to vector<32x16xf32>
    %4 = arith.maximumf %1, %3 : vector<32x16xf32>
    %c2 = arith.constant 2 : index
    %c0_4 = arith.constant 0 : index
    %c0_5 = arith.constant 0 : index
    %5 = vector.load %arg1[%c2, %c0_4, %c0_5] : memref<9x32x16xf32, #tpu.memory_space<vmem>>, vector<1x32x16xf32>
    %6 = vector.shape_cast %5 : vector<1x32x16xf32> to vector<32x16xf32>
    %7 = arith.maximumf %4, %6 : vector<32x16xf32>
    %c3 = arith.constant 3 : index
    %c0_6 = arith.constant 0 : index
    %c0_7 = arith.constant 0 : index
    %8 = vector.load %arg1[%c3, %c0_6, %c0_7] : memref<9x32x16xf32, #tpu.memory_space<vmem>>, vector<1x32x16xf32>
    %9 = vector.shape_cast %8 : vector<1x32x16xf32> to vector<32x16xf32>
    %10 = arith.maximumf %7, %9 : vector<32x16xf32>
    %c4 = arith.constant 4 : index
    %c0_8 = arith.constant 0 : index
    %c0_9 = arith.constant 0 : index
    %11 = vector.load %arg1[%c4, %c0_8, %c0_9] : memref<9x32x16xf32, #tpu.memory_space<vmem>>, vector<1x32x16xf32>
    %12 = vector.shape_cast %11 : vector<1x32x16xf32> to vector<32x16xf32>
    %13 = arith.maximumf %10, %12 : vector<32x16xf32>
    %c5 = arith.constant 5 : index
    %c0_10 = arith.constant 0 : index
    %c0_11 = arith.constant 0 : index
    %14 = vector.load %arg1[%c5, %c0_10, %c0_11] : memref<9x32x16xf32, #tpu.memory_space<vmem>>, vector<1x32x16xf32>
    %15 = vector.shape_cast %14 : vector<1x32x16xf32> to vector<32x16xf32>
    %16 = arith.maximumf %13, %15 : vector<32x16xf32>
    %c6 = arith.constant 6 : index
    %c0_12 = arith.constant 0 : index
    %c0_13 = arith.constant 0 : index
    %17 = vector.load %arg1[%c6, %c0_12, %c0_13] : memref<9x32x16xf32, #tpu.memory_space<vmem>>, vector<1x32x16xf32>
    %18 = vector.shape_cast %17 : vector<1x32x16xf32> to vector<32x16xf32>
    %19 = arith.maximumf %16, %18 : vector<32x16xf32>
    %c7 = arith.constant 7 : index
    %c0_14 = arith.constant 0 : index
    %c0_15 = arith.constant 0 : index
    %20 = vector.load %arg1[%c7, %c0_14, %c0_15] : memref<9x32x16xf32, #tpu.memory_space<vmem>>, vector<1x32x16xf32>
    %21 = vector.shape_cast %20 : vector<1x32x16xf32> to vector<32x16xf32>
    %22 = arith.maximumf %19, %21 : vector<32x16xf32>
    %c8 = arith.constant 8 : index
    %c0_16 = arith.constant 0 : index
    %c0_17 = arith.constant 0 : index
    %23 = vector.load %arg1[%c8, %c0_16, %c0_17] : memref<9x32x16xf32, #tpu.memory_space<vmem>>, vector<1x32x16xf32>
    %24 = vector.shape_cast %23 : vector<1x32x16xf32> to vector<32x16xf32>
    %25 = arith.maximumf %22, %24 : vector<32x16xf32>
    %c0_18 = arith.constant 0 : index
    %c0_19 = arith.constant 0 : index
    %26 = vector.load %arg2[%c0_18, %c0_19] : memref<32x16xf32, #tpu.memory_space<vmem>>, vector<32x16xf32>
    tpu.vector_store %arg2[%c0_18, %c0_19], %25 {strides = array<i32>} : memref<32x16xf32, #tpu.memory_space<vmem>>, vector<32x16xf32>,
    return
  }
  func.func @transform_0(%arg0: i32) -> (i32, i32, i32) {
    %c0_i32 = arith.constant 0 : i32
    %c0_i32_0 = arith.constant 0 : i32
    %c0_i32_1 = arith.constant 0 : i32
    return %c0_i32, %arg0, %c0_i32_0 : i32, i32, i32
  }
  func.func @transform_1(%arg0: i32) -> (i32, i32) {
    %c0_i32 = arith.constant 0 : i32
    %c0_i32_0 = arith.constant 0 : i32
    return %arg0, %c0_i32 : i32, i32
  }
}

module attributes {stable_mosaic.version = 11 : i64} {
  func.func @conv_bn_relu_kernel(%arg0: i32, %arg1: i32, %arg2: memref<128x16xf32, #tpu.memory_space<vmem>>, %arg3: memref<16x128xf32, #tpu.memory_space<vmem>>, %arg4: memref<1x128xf32, #tpu.memory_space<vmem>>, %arg5: memref<1x128xf32, #tpu.memory_space<vmem>>, %arg6: memref<128x128xf32, #tpu.memory_space<vmem>>, %arg7: memref<1x128xf32, #tpu.memory_space<vmem>>, %arg8: memref<1x128xf32, #tpu.memory_space<vmem>>, %arg9: memref<1x128xf32, #tpu.memory_space<vmem>>, %arg10: memref<1x128xf32, #tpu.memory_space<vmem>>) attributes {dimension_semantics = [#tpu.dimension_semantics<arbitrary>, #tpu.dimension_semantics<arbitrary>], iteration_bounds = array<i64: 2, 1>, scalar_prefetch = 0 : i64, scratch_operands = 4 : i64, tpu.core_type = #tpu.core_type<tc>, window_params = [{transform_indices = @transform_0, window_bounds = array<i64: 128, 16>}, {pipeline_mode = #tpu.pipeline_mode<synchronous>, transform_indices = @transform_1, window_bounds = array<i64: 16, 128>}, {pipeline_mode = #tpu.pipeline_mode<synchronous>, transform_indices = @transform_2, window_bounds = array<i64: 1, 128>}, {pipeline_mode = #tpu.pipeline_mode<synchronous>, transform_indices = @transform_3, window_bounds = array<i64: 1, 128>}, {transform_indices = @transform_4, window_bounds = array<i64: 128, 128>}]} {
    %c0 = arith.constant 0 : index
    %c0_0 = arith.constant 0 : index
    %0 = vector.load %arg2[%c0, %c0_0] : memref<128x16xf32, #tpu.memory_space<vmem>>, vector<128x16xf32>
    %c0_1 = arith.constant 0 : index
    %c0_2 = arith.constant 0 : index
    %1 = vector.load %arg3[%c0_1, %c0_2] : memref<16x128xf32, #tpu.memory_space<vmem>>, vector<16x128xf32>
    %cst = arith.constant dense<0.000000e+00> : vector<128x128xf32>
    %2 = tpu.matmul %0, %1, %cst {dimension_numbers = #tpu.dot_dimension_numbers<[1], [0], [0], [1], [0, 0, 1, 1], [], []>} : vector<128x16xf32>, vector<16x128xf32>, vector<128x128xf32> -> vector<128x128xf32>
    %c0_i32 = arith.constant 0 : i32
    %3 = arith.cmpi eq, %arg0, %c0_i32 : i32
    %c0_i32_3 = arith.constant 0 : i32
    %4 = arith.cmpi eq, %arg1, %c0_i32_3 : i32
    %5 = arith.andi %3, %4 : i1
    %6 = arith.extui %5 : i1 to i32
    %c0_i32_4 = arith.constant 0 : i32
    %7 = arith.cmpi ne, %6, %c0_i32_4 : i32
    scf.if %7 {
      %cst_11 = arith.constant 0.000000e+00 : f32
      %19 = vector.broadcast %cst_11 : f32 to vector<1x128xf32>
      %c0_12 = arith.constant 0 : index
      %c0_13 = arith.constant 0 : index
      %20 = vector.load %arg7[%c0_12, %c0_13] : memref<1x128xf32, #tpu.memory_space<vmem>>, vector<1x128xf32>
      tpu.vector_store %arg7[%c0_12, %c0_13], %19 {strides = array<i32>} : memref<1x128xf32, #tpu.memory_space<vmem>>, vector<1x128xf32>,
      %cst_14 = arith.constant 0.000000e+00 : f32
      %21 = vector.broadcast %cst_14 : f32 to vector<1x128xf32>
      %c0_15 = arith.constant 0 : index
      %c0_16 = arith.constant 0 : index
      %22 = vector.load %arg8[%c0_15, %c0_16] : memref<1x128xf32, #tpu.memory_space<vmem>>, vector<1x128xf32>
      tpu.vector_store %arg8[%c0_15, %c0_16], %21 {strides = array<i32>} : memref<1x128xf32, #tpu.memory_space<vmem>>, vector<1x128xf32>,
    } else {
    }
    %c0_i32_5 = arith.constant 0 : i32
    %8 = arith.cmpi eq, %arg0, %c0_i32_5 : i32
    %9 = arith.extui %8 : i1 to i32
    %c0_i32_6 = arith.constant 0 : i32
    %10 = arith.cmpi ne, %9, %c0_i32_6 : i32
    scf.if %10 {
      %c0_11 = arith.constant 0 : index
      %c0_12 = arith.constant 0 : index
      %19 = vector.load %arg7[%c0_11, %c0_12] : memref<1x128xf32, #tpu.memory_space<vmem>>, vector<1x128xf32>
      %cst_13 = arith.constant dense<0.000000e+00> : vector<128xf32>
      %20 = vector.multi_reduction <add>, %2, %cst_13 [0] : vector<128x128xf32> to vector<128xf32>
      %21 = vector.shape_cast %20 : vector<128xf32> to vector<1x128xf32>
      %22 = arith.addf %19, %21 : vector<1x128xf32>
      %c0_14 = arith.constant 0 : index
      %c0_15 = arith.constant 0 : index
      %23 = vector.load %arg7[%c0_14, %c0_15] : memref<1x128xf32, #tpu.memory_space<vmem>>, vector<1x128xf32>
      tpu.vector_store %arg7[%c0_14, %c0_15], %22 {strides = array<i32>} : memref<1x128xf32, #tpu.memory_space<vmem>>, vector<1x128xf32>,
      %c0_16 = arith.constant 0 : index
      %c0_17 = arith.constant 0 : index
      %24 = vector.load %arg8[%c0_16, %c0_17] : memref<1x128xf32, #tpu.memory_space<vmem>>, vector<1x128xf32>
      %25 = arith.mulf %2, %2 : vector<128x128xf32>
      %cst_18 = arith.constant dense<0.000000e+00> : vector<128xf32>
      %26 = vector.multi_reduction <add>, %25, %cst_18 [0] : vector<128x128xf32> to vector<128xf32>
      %27 = vector.shape_cast %26 : vector<128xf32> to vector<1x128xf32>
      %28 = arith.addf %24, %27 : vector<1x128xf32>
      %c0_19 = arith.constant 0 : index
      %c0_20 = arith.constant 0 : index
      %29 = vector.load %arg8[%c0_19, %c0_20] : memref<1x128xf32, #tpu.memory_space<vmem>>, vector<1x128xf32>
      tpu.vector_store %arg8[%c0_19, %c0_20], %28 {strides = array<i32>} : memref<1x128xf32, #tpu.memory_space<vmem>>, vector<1x128xf32>,
    } else {
    }
    %c1_i32 = arith.constant 1 : i32
    %11 = arith.cmpi eq, %arg0, %c1_i32 : i32
    %c0_i32_7 = arith.constant 0 : i32
    %12 = arith.cmpi eq, %arg1, %c0_i32_7 : i32
    %13 = arith.andi %11, %12 : i1
    %14 = arith.extui %13 : i1 to i32
    %c0_i32_8 = arith.constant 0 : i32
    %15 = arith.cmpi ne, %14, %c0_i32_8 : i32
    scf.if %15 {
      %c0_11 = arith.constant 0 : index
      %c0_12 = arith.constant 0 : index
      %19 = vector.load %arg7[%c0_11, %c0_12] : memref<1x128xf32, #tpu.memory_space<vmem>>, vector<1x128xf32>
      %cst_13 = arith.constant 7.812500e-03 : f32
      %20 = vector.broadcast %cst_13 : f32 to vector<1x128xf32>
      %21 = arith.mulf %19, %20 : vector<1x128xf32>
      %c0_14 = arith.constant 0 : index
      %c0_15 = arith.constant 0 : index
      %22 = vector.load %arg8[%c0_14, %c0_15] : memref<1x128xf32, #tpu.memory_space<vmem>>, vector<1x128xf32>
      %cst_16 = arith.constant 7.812500e-03 : f32
      %23 = vector.broadcast %cst_16 : f32 to vector<1x128xf32>
      %24 = arith.mulf %22, %23 : vector<1x128xf32>
      %25 = arith.mulf %21, %21 : vector<1x128xf32>
      %26 = arith.subf %24, %25 : vector<1x128xf32>
      %c0_17 = arith.constant 0 : index
      %c0_18 = arith.constant 0 : index
      %27 = vector.load %arg4[%c0_17, %c0_18] : memref<1x128xf32, #tpu.memory_space<vmem>>, vector<1x128xf32>
      %cst_19 = arith.constant 9.99999974E-6 : f32
      %28 = vector.broadcast %cst_19 : f32 to vector<1x128xf32>
      %29 = arith.addf %26, %28 : vector<1x128xf32>
      %30 = math.rsqrt %29 : vector<1x128xf32>
      %31 = arith.mulf %27, %30 : vector<1x128xf32>
      %c0_20 = arith.constant 0 : index
      %c0_21 = arith.constant 0 : index
      %32 = vector.load %arg9[%c0_20, %c0_21] : memref<1x128xf32, #tpu.memory_space<vmem>>, vector<1x128xf32>
      tpu.vector_store %arg9[%c0_20, %c0_21], %31 {strides = array<i32>} : memref<1x128xf32, #tpu.memory_space<vmem>>, vector<1x128xf32>,
      %c0_22 = arith.constant 0 : index
      %c0_23 = arith.constant 0 : index
      %33 = vector.load %arg5[%c0_22, %c0_23] : memref<1x128xf32, #tpu.memory_space<vmem>>, vector<1x128xf32>
      %34 = arith.mulf %21, %31 : vector<1x128xf32>
      %35 = arith.subf %33, %34 : vector<1x128xf32>
      %c0_24 = arith.constant 0 : index
      %c0_25 = arith.constant 0 : index
      %36 = vector.load %arg10[%c0_24, %c0_25] : memref<1x128xf32, #tpu.memory_space<vmem>>, vector<1x128xf32>
      tpu.vector_store %arg10[%c0_24, %c0_25], %35 {strides = array<i32>} : memref<1x128xf32, #tpu.memory_space<vmem>>, vector<1x128xf32>,
    } else {
    }
    %c1_i32_9 = arith.constant 1 : i32
    %16 = arith.cmpi eq, %arg0, %c1_i32_9 : i32
    %17 = arith.extui %16 : i1 to i32
    %c0_i32_10 = arith.constant 0 : i32
    %18 = arith.cmpi ne, %17, %c0_i32_10 : i32
    scf.if %18 {
      %c0_11 = arith.constant 0 : index
      %c0_12 = arith.constant 0 : index
      %19 = vector.load %arg9[%c0_11, %c0_12] : memref<1x128xf32, #tpu.memory_space<vmem>>, vector<1x128xf32>
      %20 = vector.broadcast %19 : vector<1x128xf32> to vector<128x128xf32>
      %21 = arith.mulf %2, %20 : vector<128x128xf32>
      %c0_13 = arith.constant 0 : index
      %c0_14 = arith.constant 0 : index
      %22 = vector.load %arg10[%c0_13, %c0_14] : memref<1x128xf32, #tpu.memory_space<vmem>>, vector<1x128xf32>
      %23 = vector.broadcast %22 : vector<1x128xf32> to vector<128x128xf32>
      %24 = arith.addf %21, %23 : vector<128x128xf32>
      %cst_15 = arith.constant 0.000000e+00 : f32
      %25 = vector.broadcast %cst_15 : f32 to vector<128x128xf32>
      %26 = arith.maximumf %24, %25 : vector<128x128xf32>
      %c0_16 = arith.constant 0 : index
      %c0_17 = arith.constant 0 : index
      %27 = vector.load %arg6[%c0_16, %c0_17] : memref<128x128xf32, #tpu.memory_space<vmem>>, vector<128x128xf32>
      tpu.vector_store %arg6[%c0_16, %c0_17], %26 {strides = array<i32>} : memref<128x128xf32, #tpu.memory_space<vmem>>, vector<128x128xf32>,
    } else {
    }
    return
  }
  func.func @transform_0(%arg0: i32, %arg1: i32) -> (i32, i32) {
    %c0_i32 = arith.constant 0 : i32
    %c0_i32_0 = arith.constant 0 : i32
    return %arg1, %c0_i32 : i32, i32
  }
  func.func @transform_1(%arg0: i32, %arg1: i32) -> (i32, i32) {
    %c0_i32 = arith.constant 0 : i32
    %c0_i32_0 = arith.constant 0 : i32
    %c0_i32_1 = arith.constant 0 : i32
    return %c0_i32, %c0_i32_0 : i32, i32
  }
  func.func @transform_2(%arg0: i32, %arg1: i32) -> (i32, i32) {
    %c0_i32 = arith.constant 0 : i32
    %c0_i32_0 = arith.constant 0 : i32
    %c0_i32_1 = arith.constant 0 : i32
    return %c0_i32, %c0_i32_0 : i32, i32
  }
  func.func @transform_3(%arg0: i32, %arg1: i32) -> (i32, i32) {
    %c0_i32 = arith.constant 0 : i32
    %c0_i32_0 = arith.constant 0 : i32
    %c0_i32_1 = arith.constant 0 : i32
    return %c0_i32, %c0_i32_0 : i32, i32
  }
  func.func @transform_4(%arg0: i32, %arg1: i32) -> (i32, i32) {
    %0 = arith.muli %arg1, %arg0 : i32
    %c0_i32 = arith.constant 0 : i32
    %c0_i32_0 = arith.constant 0 : i32
    return %0, %c0_i32 : i32, i32
  }
}

module attributes {stable_mosaic.version = 11 : i64} {
  func.func @conv_bn_relu_kernel(%arg0: i32, %arg1: i32, %arg2: memref<32x144xf32, #tpu.memory_space<vmem>>, %arg3: memref<144x128xf32, #tpu.memory_space<vmem>>, %arg4: memref<1x128xf32, #tpu.memory_space<vmem>>, %arg5: memref<1x128xf32, #tpu.memory_space<vmem>>, %arg6: memref<32x128xf32, #tpu.memory_space<vmem>>, %arg7: memref<1x128xf32, #tpu.memory_space<vmem>>, %arg8: memref<1x128xf32, #tpu.memory_space<vmem>>, %arg9: memref<1x128xf32, #tpu.memory_space<vmem>>, %arg10: memref<1x128xf32, #tpu.memory_space<vmem>>) attributes {dimension_semantics = [#tpu.dimension_semantics<arbitrary>, #tpu.dimension_semantics<arbitrary>], iteration_bounds = array<i64: 2, 1>, scalar_prefetch = 0 : i64, scratch_operands = 4 : i64, tpu.core_type = #tpu.core_type<tc>, window_params = [{transform_indices = @transform_0, window_bounds = array<i64: 32, 144>}, {pipeline_mode = #tpu.pipeline_mode<synchronous>, transform_indices = @transform_1, window_bounds = array<i64: 144, 128>}, {pipeline_mode = #tpu.pipeline_mode<synchronous>, transform_indices = @transform_2, window_bounds = array<i64: 1, 128>}, {pipeline_mode = #tpu.pipeline_mode<synchronous>, transform_indices = @transform_3, window_bounds = array<i64: 1, 128>}, {transform_indices = @transform_4, window_bounds = array<i64: 32, 128>}]} {
    %c0 = arith.constant 0 : index
    %c0_0 = arith.constant 0 : index
    %0 = vector.load %arg2[%c0, %c0_0] : memref<32x144xf32, #tpu.memory_space<vmem>>, vector<32x144xf32>
    %c0_1 = arith.constant 0 : index
    %c0_2 = arith.constant 0 : index
    %1 = vector.load %arg3[%c0_1, %c0_2] : memref<144x128xf32, #tpu.memory_space<vmem>>, vector<144x128xf32>
    %cst = arith.constant dense<0.000000e+00> : vector<32x128xf32>
    %2 = tpu.matmul %0, %1, %cst {dimension_numbers = #tpu.dot_dimension_numbers<[1], [0], [0], [1], [0, 0, 1, 1], [], []>} : vector<32x144xf32>, vector<144x128xf32>, vector<32x128xf32> -> vector<32x128xf32>
    %c0_i32 = arith.constant 0 : i32
    %3 = arith.cmpi eq, %arg0, %c0_i32 : i32
    %c0_i32_3 = arith.constant 0 : i32
    %4 = arith.cmpi eq, %arg1, %c0_i32_3 : i32
    %5 = arith.andi %3, %4 : i1
    %6 = arith.extui %5 : i1 to i32
    %c0_i32_4 = arith.constant 0 : i32
    %7 = arith.cmpi ne, %6, %c0_i32_4 : i32
    scf.if %7 {
      %cst_11 = arith.constant 0.000000e+00 : f32
      %19 = vector.broadcast %cst_11 : f32 to vector<1x128xf32>
      %c0_12 = arith.constant 0 : index
      %c0_13 = arith.constant 0 : index
      %20 = vector.load %arg7[%c0_12, %c0_13] : memref<1x128xf32, #tpu.memory_space<vmem>>, vector<1x128xf32>
      tpu.vector_store %arg7[%c0_12, %c0_13], %19 {strides = array<i32>} : memref<1x128xf32, #tpu.memory_space<vmem>>, vector<1x128xf32>,
      %cst_14 = arith.constant 0.000000e+00 : f32
      %21 = vector.broadcast %cst_14 : f32 to vector<1x128xf32>
      %c0_15 = arith.constant 0 : index
      %c0_16 = arith.constant 0 : index
      %22 = vector.load %arg8[%c0_15, %c0_16] : memref<1x128xf32, #tpu.memory_space<vmem>>, vector<1x128xf32>
      tpu.vector_store %arg8[%c0_15, %c0_16], %21 {strides = array<i32>} : memref<1x128xf32, #tpu.memory_space<vmem>>, vector<1x128xf32>,
    } else {
    }
    %c0_i32_5 = arith.constant 0 : i32
    %8 = arith.cmpi eq, %arg0, %c0_i32_5 : i32
    %9 = arith.extui %8 : i1 to i32
    %c0_i32_6 = arith.constant 0 : i32
    %10 = arith.cmpi ne, %9, %c0_i32_6 : i32
    scf.if %10 {
      %c0_11 = arith.constant 0 : index
      %c0_12 = arith.constant 0 : index
      %19 = vector.load %arg7[%c0_11, %c0_12] : memref<1x128xf32, #tpu.memory_space<vmem>>, vector<1x128xf32>
      %cst_13 = arith.constant dense<0.000000e+00> : vector<128xf32>
      %20 = vector.multi_reduction <add>, %2, %cst_13 [0] : vector<32x128xf32> to vector<128xf32>
      %21 = vector.shape_cast %20 : vector<128xf32> to vector<1x128xf32>
      %22 = arith.addf %19, %21 : vector<1x128xf32>
      %c0_14 = arith.constant 0 : index
      %c0_15 = arith.constant 0 : index
      %23 = vector.load %arg7[%c0_14, %c0_15] : memref<1x128xf32, #tpu.memory_space<vmem>>, vector<1x128xf32>
      tpu.vector_store %arg7[%c0_14, %c0_15], %22 {strides = array<i32>} : memref<1x128xf32, #tpu.memory_space<vmem>>, vector<1x128xf32>,
      %c0_16 = arith.constant 0 : index
      %c0_17 = arith.constant 0 : index
      %24 = vector.load %arg8[%c0_16, %c0_17] : memref<1x128xf32, #tpu.memory_space<vmem>>, vector<1x128xf32>
      %25 = arith.mulf %2, %2 : vector<32x128xf32>
      %cst_18 = arith.constant dense<0.000000e+00> : vector<128xf32>
      %26 = vector.multi_reduction <add>, %25, %cst_18 [0] : vector<32x128xf32> to vector<128xf32>
      %27 = vector.shape_cast %26 : vector<128xf32> to vector<1x128xf32>
      %28 = arith.addf %24, %27 : vector<1x128xf32>
      %c0_19 = arith.constant 0 : index
      %c0_20 = arith.constant 0 : index
      %29 = vector.load %arg8[%c0_19, %c0_20] : memref<1x128xf32, #tpu.memory_space<vmem>>, vector<1x128xf32>
      tpu.vector_store %arg8[%c0_19, %c0_20], %28 {strides = array<i32>} : memref<1x128xf32, #tpu.memory_space<vmem>>, vector<1x128xf32>,
    } else {
    }
    %c1_i32 = arith.constant 1 : i32
    %11 = arith.cmpi eq, %arg0, %c1_i32 : i32
    %c0_i32_7 = arith.constant 0 : i32
    %12 = arith.cmpi eq, %arg1, %c0_i32_7 : i32
    %13 = arith.andi %11, %12 : i1
    %14 = arith.extui %13 : i1 to i32
    %c0_i32_8 = arith.constant 0 : i32
    %15 = arith.cmpi ne, %14, %c0_i32_8 : i32
    scf.if %15 {
      %c0_11 = arith.constant 0 : index
      %c0_12 = arith.constant 0 : index
      %19 = vector.load %arg7[%c0_11, %c0_12] : memref<1x128xf32, #tpu.memory_space<vmem>>, vector<1x128xf32>
      %cst_13 = arith.constant 3.125000e-02 : f32
      %20 = vector.broadcast %cst_13 : f32 to vector<1x128xf32>
      %21 = arith.mulf %19, %20 : vector<1x128xf32>
      %c0_14 = arith.constant 0 : index
      %c0_15 = arith.constant 0 : index
      %22 = vector.load %arg8[%c0_14, %c0_15] : memref<1x128xf32, #tpu.memory_space<vmem>>, vector<1x128xf32>
      %cst_16 = arith.constant 3.125000e-02 : f32
      %23 = vector.broadcast %cst_16 : f32 to vector<1x128xf32>
      %24 = arith.mulf %22, %23 : vector<1x128xf32>
      %25 = arith.mulf %21, %21 : vector<1x128xf32>
      %26 = arith.subf %24, %25 : vector<1x128xf32>
      %c0_17 = arith.constant 0 : index
      %c0_18 = arith.constant 0 : index
      %27 = vector.load %arg4[%c0_17, %c0_18] : memref<1x128xf32, #tpu.memory_space<vmem>>, vector<1x128xf32>
      %cst_19 = arith.constant 9.99999974E-6 : f32
      %28 = vector.broadcast %cst_19 : f32 to vector<1x128xf32>
      %29 = arith.addf %26, %28 : vector<1x128xf32>
      %30 = math.rsqrt %29 : vector<1x128xf32>
      %31 = arith.mulf %27, %30 : vector<1x128xf32>
      %c0_20 = arith.constant 0 : index
      %c0_21 = arith.constant 0 : index
      %32 = vector.load %arg9[%c0_20, %c0_21] : memref<1x128xf32, #tpu.memory_space<vmem>>, vector<1x128xf32>
      tpu.vector_store %arg9[%c0_20, %c0_21], %31 {strides = array<i32>} : memref<1x128xf32, #tpu.memory_space<vmem>>, vector<1x128xf32>,
      %c0_22 = arith.constant 0 : index
      %c0_23 = arith.constant 0 : index
      %33 = vector.load %arg5[%c0_22, %c0_23] : memref<1x128xf32, #tpu.memory_space<vmem>>, vector<1x128xf32>
      %34 = arith.mulf %21, %31 : vector<1x128xf32>
      %35 = arith.subf %33, %34 : vector<1x128xf32>
      %c0_24 = arith.constant 0 : index
      %c0_25 = arith.constant 0 : index
      %36 = vector.load %arg10[%c0_24, %c0_25] : memref<1x128xf32, #tpu.memory_space<vmem>>, vector<1x128xf32>
      tpu.vector_store %arg10[%c0_24, %c0_25], %35 {strides = array<i32>} : memref<1x128xf32, #tpu.memory_space<vmem>>, vector<1x128xf32>,
    } else {
    }
    %c1_i32_9 = arith.constant 1 : i32
    %16 = arith.cmpi eq, %arg0, %c1_i32_9 : i32
    %17 = arith.extui %16 : i1 to i32
    %c0_i32_10 = arith.constant 0 : i32
    %18 = arith.cmpi ne, %17, %c0_i32_10 : i32
    scf.if %18 {
      %c0_11 = arith.constant 0 : index
      %c0_12 = arith.constant 0 : index
      %19 = vector.load %arg9[%c0_11, %c0_12] : memref<1x128xf32, #tpu.memory_space<vmem>>, vector<1x128xf32>
      %20 = vector.broadcast %19 : vector<1x128xf32> to vector<32x128xf32>
      %21 = arith.mulf %2, %20 : vector<32x128xf32>
      %c0_13 = arith.constant 0 : index
      %c0_14 = arith.constant 0 : index
      %22 = vector.load %arg10[%c0_13, %c0_14] : memref<1x128xf32, #tpu.memory_space<vmem>>, vector<1x128xf32>
      %23 = vector.broadcast %22 : vector<1x128xf32> to vector<32x128xf32>
      %24 = arith.addf %21, %23 : vector<32x128xf32>
      %cst_15 = arith.constant 0.000000e+00 : f32
      %25 = vector.broadcast %cst_15 : f32 to vector<32x128xf32>
      %26 = arith.maximumf %24, %25 : vector<32x128xf32>
      %c0_16 = arith.constant 0 : index
      %c0_17 = arith.constant 0 : index
      %27 = vector.load %arg6[%c0_16, %c0_17] : memref<32x128xf32, #tpu.memory_space<vmem>>, vector<32x128xf32>
      tpu.vector_store %arg6[%c0_16, %c0_17], %26 {strides = array<i32>} : memref<32x128xf32, #tpu.memory_space<vmem>>, vector<32x128xf32>,
    } else {
    }
    return
  }
  func.func @transform_0(%arg0: i32, %arg1: i32) -> (i32, i32) {
    %c0_i32 = arith.constant 0 : i32
    %c0_i32_0 = arith.constant 0 : i32
    return %arg1, %c0_i32 : i32, i32
  }
  func.func @transform_1(%arg0: i32, %arg1: i32) -> (i32, i32) {
    %c0_i32 = arith.constant 0 : i32
    %c0_i32_0 = arith.constant 0 : i32
    %c0_i32_1 = arith.constant 0 : i32
    return %c0_i32, %c0_i32_0 : i32, i32
  }
  func.func @transform_2(%arg0: i32, %arg1: i32) -> (i32, i32) {
    %c0_i32 = arith.constant 0 : i32
    %c0_i32_0 = arith.constant 0 : i32
    %c0_i32_1 = arith.constant 0 : i32
    return %c0_i32, %c0_i32_0 : i32, i32
  }
  func.func @transform_3(%arg0: i32, %arg1: i32) -> (i32, i32) {
    %c0_i32 = arith.constant 0 : i32
    %c0_i32_0 = arith.constant 0 : i32
    %c0_i32_1 = arith.constant 0 : i32
    return %c0_i32, %c0_i32_0 : i32, i32
  }
  func.func @transform_4(%arg0: i32, %arg1: i32) -> (i32, i32) {
    %0 = arith.muli %arg1, %arg0 : i32
    %c0_i32 = arith.constant 0 : i32
    %c0_i32_0 = arith.constant 0 : i32
    return %0, %c0_i32 : i32, i32
  }
}

module attributes {stable_mosaic.version = 11 : i64} {
  func.func @conv_bn_relu_kernel(%arg0: i32, %arg1: i32, %arg2: memref<32x288xf32, #tpu.memory_space<vmem>>, %arg3: memref<288x128xf32, #tpu.memory_space<vmem>>, %arg4: memref<1x128xf32, #tpu.memory_space<vmem>>, %arg5: memref<1x128xf32, #tpu.memory_space<vmem>>, %arg6: memref<32x128xf32, #tpu.memory_space<vmem>>, %arg7: memref<1x128xf32, #tpu.memory_space<vmem>>, %arg8: memref<1x128xf32, #tpu.memory_space<vmem>>, %arg9: memref<1x128xf32, #tpu.memory_space<vmem>>, %arg10: memref<1x128xf32, #tpu.memory_space<vmem>>) attributes {dimension_semantics = [#tpu.dimension_semantics<arbitrary>, #tpu.dimension_semantics<arbitrary>], iteration_bounds = array<i64: 2, 1>, scalar_prefetch = 0 : i64, scratch_operands = 4 : i64, tpu.core_type = #tpu.core_type<tc>, window_params = [{transform_indices = @transform_0, window_bounds = array<i64: 32, 288>}, {pipeline_mode = #tpu.pipeline_mode<synchronous>, transform_indices = @transform_1, window_bounds = array<i64: 288, 128>}, {pipeline_mode = #tpu.pipeline_mode<synchronous>, transform_indices = @transform_2, window_bounds = array<i64: 1, 128>}, {pipeline_mode = #tpu.pipeline_mode<synchronous>, transform_indices = @transform_3, window_bounds = array<i64: 1, 128>}, {transform_indices = @transform_4, window_bounds = array<i64: 32, 128>}]} {
    %c0 = arith.constant 0 : index
    %c0_0 = arith.constant 0 : index
    %0 = vector.load %arg2[%c0, %c0_0] : memref<32x288xf32, #tpu.memory_space<vmem>>, vector<32x288xf32>
    %c0_1 = arith.constant 0 : index
    %c0_2 = arith.constant 0 : index
    %1 = vector.load %arg3[%c0_1, %c0_2] : memref<288x128xf32, #tpu.memory_space<vmem>>, vector<288x128xf32>
    %cst = arith.constant dense<0.000000e+00> : vector<32x128xf32>
    %2 = tpu.matmul %0, %1, %cst {dimension_numbers = #tpu.dot_dimension_numbers<[1], [0], [0], [1], [0, 0, 1, 1], [], []>} : vector<32x288xf32>, vector<288x128xf32>, vector<32x128xf32> -> vector<32x128xf32>
    %c0_i32 = arith.constant 0 : i32
    %3 = arith.cmpi eq, %arg0, %c0_i32 : i32
    %c0_i32_3 = arith.constant 0 : i32
    %4 = arith.cmpi eq, %arg1, %c0_i32_3 : i32
    %5 = arith.andi %3, %4 : i1
    %6 = arith.extui %5 : i1 to i32
    %c0_i32_4 = arith.constant 0 : i32
    %7 = arith.cmpi ne, %6, %c0_i32_4 : i32
    scf.if %7 {
      %cst_11 = arith.constant 0.000000e+00 : f32
      %19 = vector.broadcast %cst_11 : f32 to vector<1x128xf32>
      %c0_12 = arith.constant 0 : index
      %c0_13 = arith.constant 0 : index
      %20 = vector.load %arg7[%c0_12, %c0_13] : memref<1x128xf32, #tpu.memory_space<vmem>>, vector<1x128xf32>
      tpu.vector_store %arg7[%c0_12, %c0_13], %19 {strides = array<i32>} : memref<1x128xf32, #tpu.memory_space<vmem>>, vector<1x128xf32>,
      %cst_14 = arith.constant 0.000000e+00 : f32
      %21 = vector.broadcast %cst_14 : f32 to vector<1x128xf32>
      %c0_15 = arith.constant 0 : index
      %c0_16 = arith.constant 0 : index
      %22 = vector.load %arg8[%c0_15, %c0_16] : memref<1x128xf32, #tpu.memory_space<vmem>>, vector<1x128xf32>
      tpu.vector_store %arg8[%c0_15, %c0_16], %21 {strides = array<i32>} : memref<1x128xf32, #tpu.memory_space<vmem>>, vector<1x128xf32>,
    } else {
    }
    %c0_i32_5 = arith.constant 0 : i32
    %8 = arith.cmpi eq, %arg0, %c0_i32_5 : i32
    %9 = arith.extui %8 : i1 to i32
    %c0_i32_6 = arith.constant 0 : i32
    %10 = arith.cmpi ne, %9, %c0_i32_6 : i32
    scf.if %10 {
      %c0_11 = arith.constant 0 : index
      %c0_12 = arith.constant 0 : index
      %19 = vector.load %arg7[%c0_11, %c0_12] : memref<1x128xf32, #tpu.memory_space<vmem>>, vector<1x128xf32>
      %cst_13 = arith.constant dense<0.000000e+00> : vector<128xf32>
      %20 = vector.multi_reduction <add>, %2, %cst_13 [0] : vector<32x128xf32> to vector<128xf32>
      %21 = vector.shape_cast %20 : vector<128xf32> to vector<1x128xf32>
      %22 = arith.addf %19, %21 : vector<1x128xf32>
      %c0_14 = arith.constant 0 : index
      %c0_15 = arith.constant 0 : index
      %23 = vector.load %arg7[%c0_14, %c0_15] : memref<1x128xf32, #tpu.memory_space<vmem>>, vector<1x128xf32>
      tpu.vector_store %arg7[%c0_14, %c0_15], %22 {strides = array<i32>} : memref<1x128xf32, #tpu.memory_space<vmem>>, vector<1x128xf32>,
      %c0_16 = arith.constant 0 : index
      %c0_17 = arith.constant 0 : index
      %24 = vector.load %arg8[%c0_16, %c0_17] : memref<1x128xf32, #tpu.memory_space<vmem>>, vector<1x128xf32>
      %25 = arith.mulf %2, %2 : vector<32x128xf32>
      %cst_18 = arith.constant dense<0.000000e+00> : vector<128xf32>
      %26 = vector.multi_reduction <add>, %25, %cst_18 [0] : vector<32x128xf32> to vector<128xf32>
      %27 = vector.shape_cast %26 : vector<128xf32> to vector<1x128xf32>
      %28 = arith.addf %24, %27 : vector<1x128xf32>
      %c0_19 = arith.constant 0 : index
      %c0_20 = arith.constant 0 : index
      %29 = vector.load %arg8[%c0_19, %c0_20] : memref<1x128xf32, #tpu.memory_space<vmem>>, vector<1x128xf32>
      tpu.vector_store %arg8[%c0_19, %c0_20], %28 {strides = array<i32>} : memref<1x128xf32, #tpu.memory_space<vmem>>, vector<1x128xf32>,
    } else {
    }
    %c1_i32 = arith.constant 1 : i32
    %11 = arith.cmpi eq, %arg0, %c1_i32 : i32
    %c0_i32_7 = arith.constant 0 : i32
    %12 = arith.cmpi eq, %arg1, %c0_i32_7 : i32
    %13 = arith.andi %11, %12 : i1
    %14 = arith.extui %13 : i1 to i32
    %c0_i32_8 = arith.constant 0 : i32
    %15 = arith.cmpi ne, %14, %c0_i32_8 : i32
    scf.if %15 {
      %c0_11 = arith.constant 0 : index
      %c0_12 = arith.constant 0 : index
      %19 = vector.load %arg7[%c0_11, %c0_12] : memref<1x128xf32, #tpu.memory_space<vmem>>, vector<1x128xf32>
      %cst_13 = arith.constant 3.125000e-02 : f32
      %20 = vector.broadcast %cst_13 : f32 to vector<1x128xf32>
      %21 = arith.mulf %19, %20 : vector<1x128xf32>
      %c0_14 = arith.constant 0 : index
      %c0_15 = arith.constant 0 : index
      %22 = vector.load %arg8[%c0_14, %c0_15] : memref<1x128xf32, #tpu.memory_space<vmem>>, vector<1x128xf32>
      %cst_16 = arith.constant 3.125000e-02 : f32
      %23 = vector.broadcast %cst_16 : f32 to vector<1x128xf32>
      %24 = arith.mulf %22, %23 : vector<1x128xf32>
      %25 = arith.mulf %21, %21 : vector<1x128xf32>
      %26 = arith.subf %24, %25 : vector<1x128xf32>
      %c0_17 = arith.constant 0 : index
      %c0_18 = arith.constant 0 : index
      %27 = vector.load %arg4[%c0_17, %c0_18] : memref<1x128xf32, #tpu.memory_space<vmem>>, vector<1x128xf32>
      %cst_19 = arith.constant 9.99999974E-6 : f32
      %28 = vector.broadcast %cst_19 : f32 to vector<1x128xf32>
      %29 = arith.addf %26, %28 : vector<1x128xf32>
      %30 = math.rsqrt %29 : vector<1x128xf32>
      %31 = arith.mulf %27, %30 : vector<1x128xf32>
      %c0_20 = arith.constant 0 : index
      %c0_21 = arith.constant 0 : index
      %32 = vector.load %arg9[%c0_20, %c0_21] : memref<1x128xf32, #tpu.memory_space<vmem>>, vector<1x128xf32>
      tpu.vector_store %arg9[%c0_20, %c0_21], %31 {strides = array<i32>} : memref<1x128xf32, #tpu.memory_space<vmem>>, vector<1x128xf32>,
      %c0_22 = arith.constant 0 : index
      %c0_23 = arith.constant 0 : index
      %33 = vector.load %arg5[%c0_22, %c0_23] : memref<1x128xf32, #tpu.memory_space<vmem>>, vector<1x128xf32>
      %34 = arith.mulf %21, %31 : vector<1x128xf32>
      %35 = arith.subf %33, %34 : vector<1x128xf32>
      %c0_24 = arith.constant 0 : index
      %c0_25 = arith.constant 0 : index
      %36 = vector.load %arg10[%c0_24, %c0_25] : memref<1x128xf32, #tpu.memory_space<vmem>>, vector<1x128xf32>
      tpu.vector_store %arg10[%c0_24, %c0_25], %35 {strides = array<i32>} : memref<1x128xf32, #tpu.memory_space<vmem>>, vector<1x128xf32>,
    } else {
    }
    %c1_i32_9 = arith.constant 1 : i32
    %16 = arith.cmpi eq, %arg0, %c1_i32_9 : i32
    %17 = arith.extui %16 : i1 to i32
    %c0_i32_10 = arith.constant 0 : i32
    %18 = arith.cmpi ne, %17, %c0_i32_10 : i32
    scf.if %18 {
      %c0_11 = arith.constant 0 : index
      %c0_12 = arith.constant 0 : index
      %19 = vector.load %arg9[%c0_11, %c0_12] : memref<1x128xf32, #tpu.memory_space<vmem>>, vector<1x128xf32>
      %20 = vector.broadcast %19 : vector<1x128xf32> to vector<32x128xf32>
      %21 = arith.mulf %2, %20 : vector<32x128xf32>
      %c0_13 = arith.constant 0 : index
      %c0_14 = arith.constant 0 : index
      %22 = vector.load %arg10[%c0_13, %c0_14] : memref<1x128xf32, #tpu.memory_space<vmem>>, vector<1x128xf32>
      %23 = vector.broadcast %22 : vector<1x128xf32> to vector<32x128xf32>
      %24 = arith.addf %21, %23 : vector<32x128xf32>
      %cst_15 = arith.constant 0.000000e+00 : f32
      %25 = vector.broadcast %cst_15 : f32 to vector<32x128xf32>
      %26 = arith.maximumf %24, %25 : vector<32x128xf32>
      %c0_16 = arith.constant 0 : index
      %c0_17 = arith.constant 0 : index
      %27 = vector.load %arg6[%c0_16, %c0_17] : memref<32x128xf32, #tpu.memory_space<vmem>>, vector<32x128xf32>
      tpu.vector_store %arg6[%c0_16, %c0_17], %26 {strides = array<i32>} : memref<32x128xf32, #tpu.memory_space<vmem>>, vector<32x128xf32>,
    } else {
    }
    return
  }
  func.func @transform_0(%arg0: i32, %arg1: i32) -> (i32, i32) {
    %c0_i32 = arith.constant 0 : i32
    %c0_i32_0 = arith.constant 0 : i32
    return %arg1, %c0_i32 : i32, i32
  }
  func.func @transform_1(%arg0: i32, %arg1: i32) -> (i32, i32) {
    %c0_i32 = arith.constant 0 : i32
    %c0_i32_0 = arith.constant 0 : i32
    %c0_i32_1 = arith.constant 0 : i32
    return %c0_i32, %c0_i32_0 : i32, i32
  }
  func.func @transform_2(%arg0: i32, %arg1: i32) -> (i32, i32) {
    %c0_i32 = arith.constant 0 : i32
    %c0_i32_0 = arith.constant 0 : i32
    %c0_i32_1 = arith.constant 0 : i32
    return %c0_i32, %c0_i32_0 : i32, i32
  }
  func.func @transform_3(%arg0: i32, %arg1: i32) -> (i32, i32) {
    %c0_i32 = arith.constant 0 : i32
    %c0_i32_0 = arith.constant 0 : i32
    %c0_i32_1 = arith.constant 0 : i32
    return %c0_i32, %c0_i32_0 : i32, i32
  }
  func.func @transform_4(%arg0: i32, %arg1: i32) -> (i32, i32) {
    %0 = arith.muli %arg1, %arg0 : i32
    %c0_i32 = arith.constant 0 : i32
    %c0_i32_0 = arith.constant 0 : i32
    return %0, %c0_i32 : i32, i32
  }
}

</mosaic_0001>

<bundles_post_ra>
// kernel: stem_block_forward.5
= control target key start
LH: loop header
LB: loop body
LE: loop exit
PB: predicated region body
PF: predicated region fallthrough
CT: control target
= control target key end

     0   :  { %s862_s15 = smov 0   ;;  %s864_s16 = smov 0   ;;  %s1123_s0 = inlined_call_operand.vmem [shape: f32[128,27], index: 0, kind: input, shape index: {}]   ;;  %s1124_s1 = inlined_call_operand.vmem [shape: f32[27,128], index: 1, kind: input, shape index: {}]   ;;  %s1125_s2 = inlined_call_operand.vmem [shape: f32[1,128], index: 2, kind: input, shape index: {}]   ;;  %s1126_s3 = inlined_call_operand.vmem [shape: f32[1,128], index: 3, kind: input, shape index: {}]   ;;  %s1127_s4 = inlined_call_operand.vmem [shape: f32[128,128], index: 4, kind: output, shape index: {}]  }
   0x1   :  { %s866_s17 = smov 0  }
   0x2 LB: > { %s26_s18 = sadd.s32 1, %s829_s16  ;;  %p687_p0 = scmp.ge.s32.totalorder %s833_s17, 1  ;;  %s833_s17 = sphi %s866_s17, %s14_s17   ;;  %s829_s16 = sphi %s864_s16, %s1129_s16   ;;  %s825_s15 = sphi %s862_s15, %s1128_s15  }
   0x3   : > { %p28_p1 = scmp.ge.s32.totalorder %s26_s18, 2  ;;  %p177_p2 = scmp.lt.s32.totalorder %s833_s17, 3 }
   0x5   : > { %s1131_s18 = smov (%p28_p1, %s26_s18), 0  ;;  %p178_p3 = pnand %p687_p0, %p177_p2 }
   0x6   : > { %v234_v0 = vld [vmem:[%s1124_s1] sm:$0xff] (!%p178_p3)  ;;  %v235_v1 = vld [vmem:[%s1124_s1 + $0x8] sm:$0xff] (!%p178_p3)  ;;  %v236_v2 = vld [vmem:[%s1124_s1 + $0x10] sm:$0xff] (!%p178_p3)  ;;  %vm287_vm0 = vcmask (!%p178_p3), 1042432   ;;  %vm238_vm1 = vcmask (!%p178_p3), 220160   ;;  %vm835_vm2 = vmmov (!%p178_p3), 1  }
   0x7   : > { %181 = sbr.rel (%p178_p3) target bundleno = 340 (0x154), region = 36  ;;  %v769_v3 = vpack.c.bf16 (!%p178_p3), %v235_v1, %v234_v0  ;;  %v237_v4 = vld [vmem:[%s1124_s1 + $0x18] sm:$0x7] (!%p178_p3)  ;;  %v218_v5 = vld [vmem:[%s1123_s0] sm:$0xff] (!%p178_p3)  ;;  %vm774_vm3 = vmpackc.low (!%p178_p3), %vm287_vm0, %vm835_vm2  ;;  %p436_p4 = scmp.eq.s32.totalorder (!%p178_p3), %s825_s15, 0 }
   0x8   : > { %v773_v6 = vpack.c.bf16 (!%p178_p3), %v237_v4, %v236_v2  ;;  %745 = vmatprep.mubr.msk.f32.mxu0 (!%p178_p3), %vm238_vm1, %v218_v5  ;;  %v226_v7 = vld [vmem:[%s1123_s0 + $0x40] sm:$0xff] (!%p178_p3)  ;;  %v219_v8 = vld [vmem:[%s1123_s0 + $0x8] sm:$0xff] (!%p178_p3)  ;;  %v220_v10 = vld [vmem:[%s1123_s0 + $0x10] sm:$0xff] (!%p178_p3) }
   0x9   : > { %770 = vmatprep.subr.bf16.mxu0 (!%p178_p3), %v769_v3  ;;  %779 = vmatprep.subr.bf16.mxu1 (!%p178_p3), %v769_v3  ;;  %v227_v9 = vld [vmem:[%s1123_s0 + $0x48] sm:$0xff] (!%p178_p3)  ;;  %v228_v11 = vld [vmem:[%s1123_s0 + $0x50] sm:$0xff] (!%p178_p3)  ;;  %v221_v12 = vld [vmem:[%s1123_s0 + $0x18] sm:$0xff] (!%p178_p3) }
   0xa   : > { %772 = vmatpush3.bf16.msra.mxu0 (!%p178_p3), %v769_v3  ;;  %781 = vmatpush3.bf16.msra.mxu1 (!%p178_p3), %v769_v3  ;;  %v229_v13 = vld [vmem:[%s1123_s0 + $0x58] sm:$0xff] (!%p178_p3)  ;;  %v222_v14 = vld [vmem:[%s1123_s0 + $0x20] sm:$0xff] (!%p178_p3)  ;;  %v223_v16 = vld [vmem:[%s1123_s0 + $0x28] sm:$0xff] (!%p178_p3) }
   0xb   : > { %775 = vmatprep.subr.msk.bf16.mxu0 (!%p178_p3), %vm774_vm3, %v773_v6  ;;  %780 = vmatprep.subr.msk.bf16.mxu1 (!%p178_p3), %vm774_vm3, %v773_v6  ;;  %v230_v15 = vld [vmem:[%s1123_s0 + $0x60] sm:$0xff] (!%p178_p3)  ;;  %v231_v17 = vld [vmem:[%s1123_s0 + $0x68] sm:$0xff] (!%p178_p3)  ;;  %v224_v18 = vld [vmem:[%s1123_s0 + $0x30] sm:$0xff] (!%p178_p3) }
   0xc   : > { %757 = vmatprep.mubr.msk.f32.mxu1 (!%p178_p3), %vm238_vm1, %v226_v7  ;;  %v232_v19 = vld [vmem:[%s1123_s0 + $0x70] sm:$0xff] (!%p178_p3)  ;;  %v225_v20 = vld [vmem:[%s1123_s0 + $0x38] sm:$0xff] (!%p178_p3) }
   0xd   : > { %v233_v21 = vld [vmem:[%s1123_s0 + $0x78] sm:$0xff] (!%p178_p3) }
   0xe   : > { %778 = vmatpush3.bf16.msk.msra.mxu0 %vm774_vm3, %v773_v6  ;;  %782 = vmatpush3.bf16.msk.msra.mxu1 %vm774_vm3, %v773_v6  ;;  %v836_v38 = vmov (%p436_p4), 0.0  }
   0xf   : > { %442 = vst [vmem:[#allocation2] sm:$0x1] (%p436_p4), %v836_v38  ;;  %443 = vst [vmem:[#allocation3] sm:$0x1] (%p436_p4), %v836_v38 }
  0x11   : > { %746 = vmatmul.mubr.msk.f32.vlgmr.msra.gmra.mrb[0].mxu0 %vm238_vm1, %v219_v8  ;;  %758 = vmatmul.mubr.msk.f32.vlgmr.msra.gmra.mrb[0].mxu1 %vm238_vm1, %v227_v9 }
  0x12   : > { %748 = vmatprep.mubr.msk.f32.mxu0 %vm238_vm1, %v220_v10  ;;  %760 = vmatprep.mubr.msk.f32.mxu1 %vm238_vm1, %v228_v11 }
  0x15   : > { %749 = vmatmul.mubr.msk.f32.gmra.mrb[2].mxu0 %vm238_vm1, %v221_v12  ;;  %761 = vmatmul.mubr.msk.f32.gmra.mrb[2].mxu1 %vm238_vm1, %v229_v13 }
  0x16   : > { %751 = vmatprep.mubr.msk.f32.mxu0 %vm238_vm1, %v222_v14  ;;  %763 = vmatprep.mubr.msk.f32.mxu1 %vm238_vm1, %v230_v15 }
  0x19   : > { %752 = vmatmul.mubr.msk.f32.gmra.mrb[4].mxu0 %vm238_vm1, %v223_v16  ;;  %764 = vmatmul.mubr.msk.f32.gmra.mrb[4].mxu1 %vm238_vm1, %v231_v17 }
  0x1a   : > { %754 = vmatprep.mubr.msk.f32.mxu0 %vm238_vm1, %v224_v18  ;;  %766 = vmatprep.mubr.msk.f32.mxu1 %vm238_vm1, %v232_v19 }
  0x1d   : > { %755 = vmatmul.mubr.msk.f32.gmra.mrb[6].mxu0 %vm238_vm1, %v225_v20  ;;  %767 = vmatmul.mubr.msk.f32.gmra.mrb[6].mxu1 %vm238_vm1, %v233_v21 }
  0xe4   : > { %v959_v22 = vpop.f32.mrb[0].mxu0  ;;  %v961_v23 = vpop.f32.mrb[0].mxu1 }
  0xe5   : > { %v963_v24 = vpop.f32.mrb[1].mxu0  ;;  %v965_v25 = vpop.f32.mrb[1].mxu1 }
  0xe8   : > { %v967_v26 = vpop.f32.mrb[2].mxu0  ;;  %v969_v27 = vpop.f32.mrb[2].mxu1 }
  0xe9   : > { %v971_v28 = vpop.f32.mrb[3].mxu0  ;;  %v973_v29 = vpop.f32.mrb[3].mxu1 }
  0xeb   : > { %441 = sbr.rel (!%p436_p4) target bundleno = 242 (0xf2), region = 40 }
  0xec   : > { %v975_v30 = vpop.f32.mrb[4].mxu0  ;;  %v977_v31 = vpop.f32.mrb[4].mxu1 }
  0xed   : > { %v979_v32 = vpop.f32.mrb[5].mxu0  ;;  %v981_v33 = vpop.f32.mrb[5].mxu1 }
  0xf0   : > { %v983_v34 = vpop.f32.mrb[6].mxu0  ;;  %v985_v35 = vpop.f32.mrb[6].mxu1 }
  0xf1   : > { %v987_v36 = vpop.f32.mrb[7].mxu0  ;;  %v989_v37 = vpop.f32.mrb[7].mxu1 }
  0xf2 PF: > { %p706_p5 = scmp.ne.s32.totalorder %s825_s15, 0 }
  0xf3   : > { %v448_v39 = vadd.f32 (!%p706_p5), %v959_v22, %v963_v24  ;;  %v472_v40 = vmul.f32 (!%p706_p5), %v963_v24, %v963_v24  ;;  %v473_v41 = vmul.f32 (!%p706_p5), %v959_v22, %v959_v22  ;;  %v474_v43 = vmul.f32 (!%p706_p5), %v971_v28, %v971_v28 }
  0xf4   : > { %446 = sbr.rel (%p706_p5) target bundleno = 290 (0x122), region = 44  ;;  %v475_v45 = vmul.f32 (!%p706_p5), %v967_v26, %v967_v26  ;;  %v476_v48 = vmul.f32 (!%p706_p5), %v979_v32, %v979_v32  ;;  %v477_v51 = vmul.f32 (!%p706_p5), %v975_v30, %v975_v30  ;;  %v478_v54 = vmul.f32 (!%p706_p5), %v987_v36, %v987_v36 }
  0xf5   : > { %v449_v42 = vadd.f32 (!%p706_p5), %v448_v39, %v971_v28  ;;  %v488_v46 = vadd.f32 (!%p706_p5), %v473_v41, %v472_v40  ;;  %v479_v57 = vmul.f32 (!%p706_p5), %v983_v34, %v983_v34  ;;  %v480_v60 = vmul.f32 (!%p706_p5), %v965_v25, %v965_v25 }
  0xf6   : > { %v481_v63 = vmul.f32 (!%p706_p5), %v961_v23, %v961_v23  ;;  %v482_v2 = vmul.f32 (!%p706_p5), %v973_v29, %v973_v29  ;;  %v483_v5 = vmul.f32 (!%p706_p5), %v969_v27, %v969_v27  ;;  %v484_v8 = vmul.f32 (!%p706_p5), %v981_v33, %v981_v33 }
  0xf7   : > { %v450_v44 = vadd.f32 (!%p706_p5), %v967_v26, %v449_v42  ;;  %v489_v49 = vadd.f32 (!%p706_p5), %v488_v46, %v474_v43  ;;  %v485_v11 = vmul.f32 (!%p706_p5), %v977_v31, %v977_v31  ;;  %v486_v14 = vmul.f32 (!%p706_p5), %v989_v37, %v989_v37 }
  0xf8   : > { %v487_v17 = vmul.f32 (!%p706_p5), %v985_v35, %v985_v35 }
  0xf9   : > { %v451_v47 = vadd.f32 (!%p706_p5), %v450_v44, %v979_v32  ;;  %v490_v52 = vadd.f32 (!%p706_p5), %v489_v49, %v475_v45  ;;  %v447_v45 = vld [vmem:[#allocation2] sm:$0x1] (!%p706_p5) }
  0xfb   : > { %v452_v50 = vadd.f32 %v975_v30, %v451_v47  ;;  %v491_v55 = vadd.f32 %v490_v52, %v476_v48 }
  0xfd   : > { %v453_v53 = vadd.f32 %v452_v50, %v987_v36  ;;  %v492_v58 = vadd.f32 %v491_v55, %v477_v51  ;;  %v471_v50 = vld [vmem:[#allocation3] sm:$0x1] }
  0xff   : > { %v454_v56 = vadd.f32 %v983_v34, %v453_v53  ;;  %v493_v61 = vadd.f32 %v492_v58, %v478_v54 }
 0x101   : > { %v455_v59 = vadd.f32 %v454_v56, %v965_v25  ;;  %v494_v0 = vadd.f32 %v493_v61, %v479_v57 }
 0x103   : > { %v456_v62 = vadd.f32 %v961_v23, %v455_v59  ;;  %v495_v3 = vadd.f32 %v494_v0, %v480_v60 }
 0x105   : > { %v457_v1 = vadd.f32 %v456_v62, %v973_v29  ;;  %v496_v6 = vadd.f32 %v495_v3, %v481_v63 }
 0x107   : > { %v458_v4 = vadd.f32 %v969_v27, %v457_v1  ;;  %v497_v9 = vadd.f32 %v496_v6, %v482_v2 }
 0x109   : > { %v459_v7 = vadd.f32 %v458_v4, %v981_v33  ;;  %v498_v12 = vadd.f32 %v497_v9, %v483_v5 }
 0x10b   : > { %v460_v10 = vadd.f32 %v977_v31, %v459_v7  ;;  %v499_v15 = vadd.f32 %v498_v12, %v484_v8 }
 0x10d   : > { %v461_v13 = vadd.f32 %v460_v10, %v989_v37  ;;  %v500_v18 = vadd.f32 %v499_v15, %v485_v11 }
 0x10f   : > { %v462_v16 = vadd.f32 %v985_v35, %v461_v13  ;;  %v501_v20 = vadd.f32 %v500_v18, %v486_v14 }
 0x111   : > { %v463_v19 = vrot.slane %v462_v16, 4  ;;  %v502_v38 = vadd.f32 %v501_v20, %v487_v17 }
 0x113   : > { %v464_v21 = vadd.f32 %v463_v19, %v462_v16  ;;  %v503_v40 = vrot.slane %v502_v38, 4 }
 0x115   : > { %v465_v39 = vrot.slane %v464_v21, 2  ;;  %v504_v42 = vadd.f32 %v503_v40, %v502_v38 }
 0x117   : > { %v466_v41 = vadd.f32 %v465_v39, %v464_v21  ;;  %v505_v44 = vrot.slane %v504_v42, 2 }
 0x119   : > { %v467_v43 = vrot.slane %v466_v41, 1  ;;  %v506_v47 = vadd.f32 %v505_v44, %v504_v42 }
 0x11b   : > { %v468_v46 = vadd.f32 %v467_v43, %v466_v41  ;;  %v507_v49 = vrot.slane %v506_v47, 1 }
 0x11d   : > { %v469_v48 = vadd.f32 %v468_v46, %v447_v45  ;;  %v508_v51 = vadd.f32 %v507_v49, %v506_v47 }
 0x11f   : > { %470 = vst [vmem:[#allocation2] sm:$0x1] %v469_v48  ;;  %v509_v52 = vadd.f32 %v508_v51, %v471_v50 }
 0x121   : > { %510 = vst [vmem:[#allocation3] sm:$0x1] %v509_v52 }
 0x122 PF: > { %p511_p6 = scmp.eq.s32.totalorder %s825_s15, 1 }
 0x123   : > { %v522_v60 = vld [vmem:[%s1125_s2] sm:$0x1] (%p511_p6) }
 0x124   : > { %515 = sbr.rel (!%p511_p6) target bundleno = 321 (0x141), region = 48  ;;  %v527_v63 = vld [vmem:[%s1126_s3] sm:$0x1] (%p511_p6) }
 0x126   : > { %v516_v53 = vld [vmem:[#allocation2] sm:$0x1] (%p511_p6) }
 0x127   : > { %v517_v55 = vmul.f32 (%p511_p6), 0.0078125, %v516_v53 }
 0x128   : > { %v518_v54 = vld [vmem:[#allocation3] sm:$0x1] (%p511_p6) }
 0x129   : > { %v519_v56 = vmul.f32 (%p511_p6), 0.0078125, %v518_v54  ;;  %v520_v57 = vmul.f32 (%p511_p6), %v517_v55, %v517_v55 }
 0x12b   : > { %v521_v58 = vsub.f32 %v519_v56, %v520_v57 }
 0x12d   : > { %v523_v59 = vadd.f32 1e-05, %v521_v58 }
 0x12f   : > { %809 = vrsqrt.f32 %v523_v59 }
 0x139   : > { %v810_v61 = vpop.eup %809 }
 0x13a   : > { %v525_v62 = vmul.f32 %v810_v61, %v522_v60 }
 0x13c   : > { %526 = vst [vmem:[#allocation4] sm:$0x1] %v525_v62  ;;  %v528_v0 = vmul.f32 %v525_v62, %v517_v55 }
 0x13e   : > { %v529_v1 = vsub.f32 %v527_v63, %v528_v0 }
 0x140   : > { %530 = vst [vmem:[#allocation5] sm:$0x1] %v529_v1 }
 0x141 PF: > { %p708_p7 = scmp.ne.s32.totalorder %s825_s15, 1 }
 0x143   : > { %533 = sbr.rel (%p708_p7) target bundleno = 340 (0x154), region = 52  ;;  %v709_v2 = vld [vmem:[#allocation4] ss:$0 sm:$0xff] (!%p708_p7) }
 0x144   : > { %v541_v4 = vmul.f32 (!%p708_p7), %v709_v2, %v963_v24  ;;  %v542_v5 = vmul.f32 (!%p708_p7), %v959_v22, %v709_v2  ;;  %v543_v6 = vmul.f32 (!%p708_p7), %v709_v2, %v971_v28  ;;  %v544_v7 = vmul.f32 (!%p708_p7), %v967_v26, %v709_v2 }
 0x145   : > { %v545_v8 = vmul.f32 (!%p708_p7), %v709_v2, %v979_v32  ;;  %v546_v9 = vmul.f32 (!%p708_p7), %v975_v30, %v709_v2  ;;  %v547_v10 = vmul.f32 (!%p708_p7), %v709_v2, %v987_v36  ;;  %v548_v11 = vmul.f32 (!%p708_p7), %v983_v34, %v709_v2 }
 0x146   : > { %v549_v34 = vmul.f32 (!%p708_p7), %v709_v2, %v965_v25  ;;  %v550_v36 = vmul.f32 (!%p708_p7), %v961_v23, %v709_v2  ;;  %v551_v38 = vmul.f32 (!%p708_p7), %v709_v2, %v973_v29  ;;  %v552_v39 = vmul.f32 (!%p708_p7), %v969_v27, %v709_v2 }
 0x147   : > { %v710_v3 = vld [vmem:[#allocation5] ss:$0 sm:$0xff] (!%p708_p7)  ;;  %v553_v23 = vmul.f32 (!%p708_p7), %v709_v2, %v981_v33  ;;  %v554_v25 = vmul.f32 (!%p708_p7), %v977_v31, %v709_v2  ;;  %v555_v27 = vmul.f32 (!%p708_p7), %v709_v2, %v989_v37  ;;  %v556_v29 = vmul.f32 (!%p708_p7), %v985_v35, %v709_v2 }
 0x148   : > { %v564_v12 = vadd.f32 (!%p708_p7), %v710_v3, %v541_v4  ;;  %v565_v13 = vadd.f32 (!%p708_p7), %v710_v3, %v542_v5  ;;  %v566_v14 = vadd.f32 (!%p708_p7), %v710_v3, %v543_v6  ;;  %v567_v15 = vadd.f32 (!%p708_p7), %v710_v3, %v544_v7 }
 0x149   : > { %v568_v16 = vadd.f32 (!%p708_p7), %v710_v3, %v545_v8  ;;  %v569_v24 = vadd.f32 (!%p708_p7), %v710_v3, %v546_v9  ;;  %v570_v17 = vadd.f32 (!%p708_p7), %v710_v3, %v547_v10  ;;  %v571_v22 = vadd.f32 (!%p708_p7), %v710_v3, %v548_v11 }
 0x14a   : > { %v580_v18 = vmax.f32 %v564_v12, 0.0  ;;  %v581_v28 = vmax.f32 %v565_v13, 0.0  ;;  %v582_v19 = vmax.f32 %v566_v14, 0.0  ;;  %v583_v26 = vmax.f32 %v567_v15, 0.0 }
 0x14b   : > { %v584_v20 = vmax.f32 %v568_v16, 0.0  ;;  %v585_v32 = vmax.f32 %v569_v24, 0.0  ;;  %v586_v21 = vmax.f32 %v570_v17, 0.0  ;;  %v587_v30 = vmax.f32 %v571_v22, 0.0 }
 0x14c   : > { %596 = vst [vmem:[%s1127_s4] sm:$0xff] %v580_v18  ;;  %597 = vst [vmem:[%s1127_s4 + $0x8] sm:$0xff] %v581_v28  ;;  %v572_v40 = vadd.f32 %v710_v3, %v549_v34  ;;  %v573_v41 = vadd.f32 %v710_v3, %v550_v36  ;;  %v574_v42 = vadd.f32 %v710_v3, %v551_v38 }
 0x14d   : > { %598 = vst [vmem:[%s1127_s4 + $0x10] sm:$0xff] %v582_v19  ;;  %599 = vst [vmem:[%s1127_s4 + $0x18] sm:$0xff] %v583_v26  ;;  %v575_v43 = vadd.f32 %v710_v3, %v552_v39  ;;  %v576_v44 = vadd.f32 %v710_v3, %v553_v23  ;;  %v577_v45 = vadd.f32 %v710_v3, %v554_v25 }
 0x14e   : > { %600 = vst [vmem:[%s1127_s4 + $0x20] sm:$0xff] %v584_v20  ;;  %601 = vst [vmem:[%s1127_s4 + $0x28] sm:$0xff] %v585_v32  ;;  %v578_v46 = vadd.f32 %v710_v3, %v555_v27  ;;  %v579_v47 = vadd.f32 %v710_v3, %v556_v29  ;;  %v588_v48 = vmax.f32 %v572_v40, 0.0  ;;  %v589_v49 = vmax.f32 %v573_v41, 0.0 }
 0x14f   : > { %602 = vst [vmem:[%s1127_s4 + $0x30] sm:$0xff] %v586_v21  ;;  %603 = vst [vmem:[%s1127_s4 + $0x38] sm:$0xff] %v587_v30  ;;  %v590_v50 = vmax.f32 %v574_v42, 0.0  ;;  %v591_v51 = vmax.f32 %v575_v43, 0.0  ;;  %v592_v52 = vmax.f32 %v576_v44, 0.0  ;;  %v593_v33 = vmax.f32 %v577_v45, 0.0 }
 0x150   : > { %v594_v53 = vmax.f32 %v578_v46, 0.0  ;;  %v595_v31 = vmax.f32 %v579_v47, 0.0  ;;  %604 = vst [vmem:[%s1127_s4 + $0x40] sm:$0xff] %v588_v48  ;;  %605 = vst [vmem:[%s1127_s4 + $0x48] sm:$0xff] %v589_v49 }
 0x151   : > { %606 = vst [vmem:[%s1127_s4 + $0x50] sm:$0xff] %v590_v50  ;;  %607 = vst [vmem:[%s1127_s4 + $0x58] sm:$0xff] %v591_v51 }
 0x152   : > { %608 = vst [vmem:[%s1127_s4 + $0x60] sm:$0xff] %v592_v52  ;;  %609 = vst [vmem:[%s1127_s4 + $0x68] sm:$0xff] %v593_v33 }
 0x153   : > { %610 = vst [vmem:[%s1127_s4 + $0x70] sm:$0xff] %v594_v53  ;;  %611 = vst [vmem:[%s1127_s4 + $0x78] sm:$0xff] %v595_v31 }
 0x154 PF: > { %s14_s17 = sadd.s32 1, %s833_s17   ;;  %s1128_s15 = smov %s829_s16 }
 0x155   : > { %p11_p8 = scmp.ge.s32.totalorder %s14_s17, 4   ;;  %s1129_s16 = smov %s1131_s18 }
 0x157   :  { %13 = sbr.rel (!%p11_p8) target bundleno = 2 (0x2), region = 82 }

// kernel: stem_block_forward.6
= control target key start
LH: loop header
LB: loop body
LE: loop exit
PB: predicated region body
PF: predicated region fallthrough
CT: control target
= control target key end

     0   :  { %vm84_vm0 = vcmask 130048   ;;  %s259_s0 = inlined_call_operand.vmem [shape: f32[9,32,16], index: 0, kind: input, shape index: {}]   ;;  %s260_s1 = inlined_call_operand.vmem [shape: f32[32,16], index: 1, kind: output, shape index: {}]  }
   0x1   :  { %v8_v0 = vld [vmem:[%s259_s0] sm:$0xff]  ;;  %v9_v6 = vld [vmem:[%s259_s0 + $0x8] sm:$0xff]  ;;  %v10_v15 = vld [vmem:[%s259_s0 + $0x10] sm:$0xff] }
   0x2   :  { %v93_v1 = vld [vmem:[%s259_s0 + $0x20] sm:$0xff]  ;;  %v94_v7 = vld [vmem:[%s259_s0 + $0x28] sm:$0xff]  ;;  %v95_v16 = vld [vmem:[%s259_s0 + $0x30] sm:$0xff] }
   0x3   :  { %v97_v2 = vld [vmem:[%s259_s0 + $0x40] sm:$0xff]  ;;  %v17_v3 = vmax.f32 %v8_v0, %v93_v1  ;;  %v98_v8 = vld [vmem:[%s259_s0 + $0x48] sm:$0xff]  ;;  %v18_v10 = vmax.f32 %v9_v6, %v94_v7  ;;  %v99_v17 = vld [vmem:[%s259_s0 + $0x50] sm:$0xff]  ;;  %v19_v20 = vmax.f32 %v10_v15, %v95_v16 }
   0x4   :  { %v101_v4 = vld [vmem:[%s259_s0 + $0x60] sm:$0xff]  ;;  %v102_v13 = vld [vmem:[%s259_s0 + $0x68] sm:$0xff]  ;;  %v103_v24 = vld [vmem:[%s259_s0 + $0x70] sm:$0xff] }
   0x5   :  { %v26_v5 = vmax.f32 %v17_v3, %v97_v2  ;;  %v105_v9 = vld [vmem:[%s259_s0 + $0x80] sm:$0xff]  ;;  %v27_v14 = vmax.f32 %v18_v10, %v98_v8  ;;  %v106_v19 = vld [vmem:[%s259_s0 + $0x88] sm:$0xff]  ;;  %v28_v26 = vmax.f32 %v19_v20, %v99_v17  ;;  %v11_v27 = vld [vmem:[%s259_s0 + $0x18] sm:$0xff] }
   0x6   :  { %v109_v12 = vld [vmem:[%s259_s0 + $0xa0] sm:$0xff]  ;;  %v110_v23 = vld [vmem:[%s259_s0 + $0xa8] sm:$0xff]  ;;  %v96_v28 = vld [vmem:[%s259_s0 + $0x38] sm:$0xff] }
   0x7   :  { %v35_v11 = vmax.f32 %v26_v5, %v101_v4  ;;  %v113_v21 = vld [vmem:[%s259_s0 + $0xc0] sm:$0xff]  ;;  %v36_v22 = vmax.f32 %v27_v14, %v102_v13  ;;  %v100_v29 = vld [vmem:[%s259_s0 + $0x58] sm:$0xff]  ;;  %v107_v32 = vld [vmem:[%s259_s0 + $0x90] sm:$0xff]  ;;  %v20_v33 = vmax.f32 %v11_v27, %v96_v28  ;;  %v37_v36 = vmax.f32 %v28_v26, %v103_v24 }
   0x8   :  { %v117_v30 = vld [vmem:[%s259_s0 + $0xe0] sm:$0xff]  ;;  %v114_v35 = vld [vmem:[%s259_s0 + $0xc8] sm:$0xff]  ;;  %v104_v37 = vld [vmem:[%s259_s0 + $0x78] sm:$0xff] }
   0x9   :  { %v44_v18 = vmax.f32 %v35_v11, %v105_v9  ;;  %v45_v31 = vmax.f32 %v36_v22, %v106_v19  ;;  %v121_v38 = vld [vmem:[%s259_s0 + $0x100] sm:$0xff]  ;;  %v111_v40 = vld [vmem:[%s259_s0 + $0xb0] sm:$0xff]  ;;  %v29_v41 = vmax.f32 %v20_v33, %v100_v29  ;;  %v118_v43 = vld [vmem:[%s259_s0 + $0xe8] sm:$0xff]  ;;  %v46_v44 = vmax.f32 %v37_v36, %v107_v32 }
   0xa   :  { %v108_v45 = vld [vmem:[%s259_s0 + $0x98] sm:$0xff]  ;;  %v115_v47 = vld [vmem:[%s259_s0 + $0xd0] sm:$0xff]  ;;  %v122_v50 = vld [vmem:[%s259_s0 + $0x108] sm:$0xff] }
   0xb   :  { %v53_v25 = vmax.f32 %v44_v18, %v109_v12  ;;  %v54_v39 = vmax.f32 %v45_v31, %v110_v23  ;;  %v38_v48 = vmax.f32 %v29_v41, %v104_v37  ;;  %v55_v51 = vmax.f32 %v46_v44, %v111_v40  ;;  %v112_v52 = vld [vmem:[%s259_s0 + $0xb8] sm:$0xff]  ;;  %v119_v54 = vld [vmem:[%s259_s0 + $0xf0] sm:$0xff] }
   0xc   :  { %v116_v57 = vld [vmem:[%s259_s0 + $0xd8] sm:$0xff]  ;;  %v123_v59 = vld [vmem:[%s259_s0 + $0x110] sm:$0xff] }
   0xd   :  { %v62_v34 = vmax.f32 %v53_v25, %v113_v21  ;;  %v63_v46 = vmax.f32 %v54_v39, %v114_v35  ;;  %v47_v55 = vmax.f32 %v38_v48, %v108_v45  ;;  %v64_v56 = vmax.f32 %v55_v51, %v115_v47  ;;  %v120_v62 = vld [vmem:[%s259_s0 + $0xf8] sm:$0xff] }
   0xe   :  { %v124_v1 = vld [vmem:[%s259_s0 + $0x118] sm:$0xff] }
   0xf   :  { %v71_v42 = vmax.f32 %v62_v34, %v117_v30  ;;  %v72_v53 = vmax.f32 %v63_v46, %v118_v43  ;;  %v56_v60 = vmax.f32 %v47_v55, %v112_v52  ;;  %v73_v61 = vmax.f32 %v64_v56, %v119_v54 }
  0x11   :  { %v80_v49 = vmax.f32 %v71_v42, %v121_v38  ;;  %v81_v58 = vmax.f32 %v72_v53, %v122_v50  ;;  %v65_v63 = vmax.f32 %v56_v60, %v116_v57  ;;  %v82_v0 = vmax.f32 %v73_v61, %v123_v59 }
  0x13   :  { %85 = vst.msk [vmem:[%s260_s1] sm:$0xff] %vm84_vm0, %v80_v49  ;;  %86 = vst.msk [vmem:[%s260_s1 + $0x8] sm:$0xff] %vm84_vm0, %v81_v58  ;;  %v74_v2 = vmax.f32 %v65_v63, %v120_v62 }
  0x14   :  { %87 = vst.msk [vmem:[%s260_s1 + $0x10] sm:$0xff] %vm84_vm0, %v82_v0 }
  0x15   :  { %v83_v3 = vmax.f32 %v74_v2, %v124_v1 }
  0x17   :  { %88 = vst.msk [vmem:[%s260_s1 + $0x18] sm:$0xff] %vm84_vm0, %v83_v3 }

// kernel: stem_block_forward.7
= control target key start
LH: loop header
LB: loop body
LE: loop exit
PB: predicated region body
PF: predicated region fallthrough
CT: control target
= control target key end

     0   :  { %s839_s15 = smov 0   ;;  %s841_s16 = smov 0   ;;  %s1094_s0 = inlined_call_operand.vmem [shape: f32[128,16], index: 0, kind: input, shape index: {}]   ;;  %s1095_s1 = inlined_call_operand.vmem [shape: f32[16,128], index: 1, kind: input, shape index: {}]   ;;  %s1096_s2 = inlined_call_operand.vmem [shape: f32[1,128], index: 2, kind: input, shape index: {}]   ;;  %s1097_s3 = inlined_call_operand.vmem [shape: f32[1,128], index: 3, kind: input, shape index: {}]   ;;  %s1098_s4 = inlined_call_operand.vmem [shape: f32[128,128], index: 4, kind: output, shape index: {}]  }
   0x1   :  { %s843_s17 = smov 0  }
   0x2 LB: > { %s26_s18 = sadd.s32 1, %s807_s16  ;;  %p681_p0 = scmp.ge.s32.totalorder %s811_s17, 1  ;;  %s811_s17 = sphi %s843_s17, %s14_s17   ;;  %s807_s16 = sphi %s841_s16, %s1100_s16   ;;  %s803_s15 = sphi %s839_s15, %s1099_s15  }
   0x3   : > { %p28_p1 = scmp.ge.s32.totalorder %s26_s18, 2  ;;  %p177_p2 = scmp.lt.s32.totalorder %s811_s17, 3 }
   0x5   : > { %s1102_s18 = smov (%p28_p1, %s26_s18), 0  ;;  %p178_p3 = pnand %p681_p0, %p177_p2 }
   0x6   : > { %v234_v0 = vld [vmem:[%s1095_s1] sm:$0xff] (!%p178_p3)  ;;  %v235_v1 = vld [vmem:[%s1095_s1 + $0x8] sm:$0xff] (!%p178_p3)  ;;  %vm236_vm0 = vcmask (!%p178_p3), 130048   ;;  %v220_v7 = vld [vmem:[%s1094_s0 + $0x10] sm:$0xff] (!%p178_p3)  ;;  %p430_p4 = scmp.eq.s32.totalorder (!%p178_p3), %s803_s15, 0 }
   0x7   : > { %181 = sbr.rel (%p178_p3) target bundleno = 337 (0x151), region = 36  ;;  %v218_v2 = vld [vmem:[%s1094_s0] sm:$0xff] (!%p178_p3)  ;;  %v756_v3 = vpack.c.bf16 (!%p178_p3), %v235_v1, %v234_v0  ;;  %v219_v5 = vld [vmem:[%s1094_s0 + $0x8] sm:$0xff] (!%p178_p3)  ;;  %v228_v8 = vld [vmem:[%s1094_s0 + $0x50] sm:$0xff] (!%p178_p3) }
   0x8   : > { %732 = vmatprep.mubr.msk.f32.mxu0 (!%p178_p3), %vm236_vm0, %v218_v2  ;;  %v226_v4 = vld [vmem:[%s1094_s0 + $0x40] sm:$0xff] (!%p178_p3)  ;;  %v227_v6 = vld [vmem:[%s1094_s0 + $0x48] sm:$0xff] (!%p178_p3)  ;;  %v221_v9 = vld [vmem:[%s1094_s0 + $0x18] sm:$0xff] (!%p178_p3) }
   0x9   : > { %744 = vmatprep.mubr.msk.f32.mxu1 (!%p178_p3), %vm236_vm0, %v226_v4  ;;  %757 = vmatprep.subr.bf16.mxu0 (!%p178_p3), %v756_v3  ;;  %v229_v10 = vld [vmem:[%s1094_s0 + $0x58] sm:$0xff] (!%p178_p3)  ;;  %v222_v11 = vld [vmem:[%s1094_s0 + $0x20] sm:$0xff] (!%p178_p3)  ;;  %v223_v13 = vld [vmem:[%s1094_s0 + $0x28] sm:$0xff] (!%p178_p3) }
   0xa   : > { %760 = vmatprep.subr.bf16.mxu1 (!%p178_p3), %v756_v3  ;;  %759 = vmatpush3.bf16.msra.mxu0 (!%p178_p3), %v756_v3  ;;  %v230_v12 = vld [vmem:[%s1094_s0 + $0x60] sm:$0xff] (!%p178_p3)  ;;  %v231_v14 = vld [vmem:[%s1094_s0 + $0x68] sm:$0xff] (!%p178_p3)  ;;  %v224_v15 = vld [vmem:[%s1094_s0 + $0x30] sm:$0xff] (!%p178_p3) }
   0xb   : > { %761 = vmatpush3.bf16.msra.mxu1 (!%p178_p3), %v756_v3  ;;  %v232_v16 = vld [vmem:[%s1094_s0 + $0x70] sm:$0xff] (!%p178_p3)  ;;  %v225_v17 = vld [vmem:[%s1094_s0 + $0x38] sm:$0xff] (!%p178_p3) }
   0xc   : > { %v233_v18 = vld [vmem:[%s1094_s0 + $0x78] sm:$0xff] (!%p178_p3) }
   0xd   : > { %733 = vmatmul.mubr.msk.f32.vlgmr.msra.gmra.mrb[0].mxu0 (!%p178_p3), %vm236_vm0, %v219_v5 }
   0xe   : > { %745 = vmatmul.mubr.msk.f32.vlgmr.msra.gmra.mrb[0].mxu1 %vm236_vm0, %v227_v6  ;;  %735 = vmatprep.mubr.msk.f32.mxu0 %vm236_vm0, %v220_v7  ;;  %v813_v35 = vmov (%p430_p4), 0.0  }
   0xf   : > { %747 = vmatprep.mubr.msk.f32.mxu1 %vm236_vm0, %v228_v8  ;;  %436 = vst [vmem:[#allocation2] sm:$0x1] (%p430_p4), %v813_v35  ;;  %437 = vst [vmem:[#allocation3] sm:$0x1] (%p430_p4), %v813_v35 }
  0x11   : > { %736 = vmatmul.mubr.msk.f32.gmra.mrb[2].mxu0 %vm236_vm0, %v221_v9 }
  0x12   : > { %748 = vmatmul.mubr.msk.f32.gmra.mrb[2].mxu1 %vm236_vm0, %v229_v10  ;;  %738 = vmatprep.mubr.msk.f32.mxu0 %vm236_vm0, %v222_v11 }
  0x13   : > { %750 = vmatprep.mubr.msk.f32.mxu1 %vm236_vm0, %v230_v12 }
  0x15   : > { %739 = vmatmul.mubr.msk.f32.gmra.mrb[4].mxu0 %vm236_vm0, %v223_v13 }
  0x16   : > { %751 = vmatmul.mubr.msk.f32.gmra.mrb[4].mxu1 %vm236_vm0, %v231_v14  ;;  %741 = vmatprep.mubr.msk.f32.mxu0 %vm236_vm0, %v224_v15 }
  0x17   : > { %753 = vmatprep.mubr.msk.f32.mxu1 %vm236_vm0, %v232_v16 }
  0x19   : > { %742 = vmatmul.mubr.msk.f32.gmra.mrb[6].mxu0 %vm236_vm0, %v225_v17 }
  0x1a   : > { %754 = vmatmul.mubr.msk.f32.gmra.mrb[6].mxu1 %vm236_vm0, %v233_v18 }
  0xe0   : > { %v930_v19 = vpop.f32.mrb[0].mxu0 }
  0xe1   : > { %v932_v20 = vpop.f32.mrb[0].mxu1  ;;  %v934_v21 = vpop.f32.mrb[1].mxu0 }
  0xe2   : > { %v936_v22 = vpop.f32.mrb[1].mxu1 }
  0xe4   : > { %v938_v23 = vpop.f32.mrb[2].mxu0 }
  0xe5   : > { %v940_v24 = vpop.f32.mrb[2].mxu1  ;;  %v942_v25 = vpop.f32.mrb[3].mxu0 }
  0xe6   : > { %v944_v26 = vpop.f32.mrb[3].mxu1 }
  0xe8   : > { %v946_v27 = vpop.f32.mrb[4].mxu0  ;;  %435 = sbr.rel (!%p430_p4) target bundleno = 239 (0xef), region = 40 }
  0xe9   : > { %v948_v28 = vpop.f32.mrb[4].mxu1  ;;  %v950_v29 = vpop.f32.mrb[5].mxu0 }
  0xea   : > { %v952_v30 = vpop.f32.mrb[5].mxu1 }
  0xec   : > { %v954_v31 = vpop.f32.mrb[6].mxu0 }
  0xed   : > { %v956_v32 = vpop.f32.mrb[6].mxu1  ;;  %v958_v33 = vpop.f32.mrb[7].mxu0 }
  0xee   : > { %v960_v34 = vpop.f32.mrb[7].mxu1 }
  0xef PF: > { %p699_p5 = scmp.ne.s32.totalorder %s803_s15, 0 }
  0xf0   : > { %v442_v36 = vadd.f32 (!%p699_p5), %v930_v19, %v934_v21  ;;  %v466_v37 = vmul.f32 (!%p699_p5), %v934_v21, %v934_v21  ;;  %v467_v38 = vmul.f32 (!%p699_p5), %v930_v19, %v930_v19  ;;  %v468_v40 = vmul.f32 (!%p699_p5), %v942_v25, %v942_v25 }
  0xf1   : > { %440 = sbr.rel (%p699_p5) target bundleno = 287 (0x11f), region = 44  ;;  %v469_v42 = vmul.f32 (!%p699_p5), %v938_v23, %v938_v23  ;;  %v470_v45 = vmul.f32 (!%p699_p5), %v950_v29, %v950_v29  ;;  %v471_v48 = vmul.f32 (!%p699_p5), %v946_v27, %v946_v27  ;;  %v472_v51 = vmul.f32 (!%p699_p5), %v958_v33, %v958_v33 }
  0xf2   : > { %v443_v39 = vadd.f32 (!%p699_p5), %v442_v36, %v942_v25  ;;  %v482_v43 = vadd.f32 (!%p699_p5), %v467_v38, %v466_v37  ;;  %v473_v54 = vmul.f32 (!%p699_p5), %v954_v31, %v954_v31  ;;  %v474_v57 = vmul.f32 (!%p699_p5), %v936_v22, %v936_v22 }
  0xf3   : > { %v475_v60 = vmul.f32 (!%p699_p5), %v932_v20, %v932_v20  ;;  %v476_v63 = vmul.f32 (!%p699_p5), %v944_v26, %v944_v26  ;;  %v477_v2 = vmul.f32 (!%p699_p5), %v940_v24, %v940_v24  ;;  %v478_v5 = vmul.f32 (!%p699_p5), %v952_v30, %v952_v30 }
  0xf4   : > { %v444_v41 = vadd.f32 (!%p699_p5), %v938_v23, %v443_v39  ;;  %v483_v46 = vadd.f32 (!%p699_p5), %v482_v43, %v468_v40  ;;  %v479_v8 = vmul.f32 (!%p699_p5), %v948_v28, %v948_v28  ;;  %v480_v11 = vmul.f32 (!%p699_p5), %v960_v34, %v960_v34 }
  0xf5   : > { %v481_v14 = vmul.f32 (!%p699_p5), %v956_v32, %v956_v32 }
  0xf6   : > { %v445_v44 = vadd.f32 (!%p699_p5), %v444_v41, %v950_v29  ;;  %v484_v49 = vadd.f32 (!%p699_p5), %v483_v46, %v469_v42  ;;  %v441_v42 = vld [vmem:[#allocation2] sm:$0x1] (!%p699_p5) }
  0xf8   : > { %v446_v47 = vadd.f32 %v946_v27, %v445_v44  ;;  %v485_v52 = vadd.f32 %v484_v49, %v470_v45 }
  0xfa   : > { %v447_v50 = vadd.f32 %v446_v47, %v958_v33  ;;  %v486_v55 = vadd.f32 %v485_v52, %v471_v48  ;;  %v465_v47 = vld [vmem:[#allocation3] sm:$0x1] }
  0xfc   : > { %v448_v53 = vadd.f32 %v954_v31, %v447_v50  ;;  %v487_v58 = vadd.f32 %v486_v55, %v472_v51 }
  0xfe   : > { %v449_v56 = vadd.f32 %v448_v53, %v936_v22  ;;  %v488_v61 = vadd.f32 %v487_v58, %v473_v54 }
 0x100   : > { %v450_v59 = vadd.f32 %v932_v20, %v449_v56  ;;  %v489_v0 = vadd.f32 %v488_v61, %v474_v57 }
 0x102   : > { %v451_v62 = vadd.f32 %v450_v59, %v944_v26  ;;  %v490_v3 = vadd.f32 %v489_v0, %v475_v60 }
 0x104   : > { %v452_v1 = vadd.f32 %v940_v24, %v451_v62  ;;  %v491_v6 = vadd.f32 %v490_v3, %v476_v63 }
 0x106   : > { %v453_v4 = vadd.f32 %v452_v1, %v952_v30  ;;  %v492_v9 = vadd.f32 %v491_v6, %v477_v2 }
 0x108   : > { %v454_v7 = vadd.f32 %v948_v28, %v453_v4  ;;  %v493_v12 = vadd.f32 %v492_v9, %v478_v5 }
 0x10a   : > { %v455_v10 = vadd.f32 %v454_v7, %v960_v34  ;;  %v494_v15 = vadd.f32 %v493_v12, %v479_v8 }
 0x10c   : > { %v456_v13 = vadd.f32 %v956_v32, %v455_v10  ;;  %v495_v17 = vadd.f32 %v494_v15, %v480_v11 }
 0x10e   : > { %v457_v16 = vrot.slane %v456_v13, 4  ;;  %v496_v35 = vadd.f32 %v495_v17, %v481_v14 }
 0x110   : > { %v458_v18 = vadd.f32 %v457_v16, %v456_v13  ;;  %v497_v37 = vrot.slane %v496_v35, 4 }
 0x112   : > { %v459_v36 = vrot.slane %v458_v18, 2  ;;  %v498_v39 = vadd.f32 %v497_v37, %v496_v35 }
 0x114   : > { %v460_v38 = vadd.f32 %v459_v36, %v458_v18  ;;  %v499_v41 = vrot.slane %v498_v39, 2 }
 0x116   : > { %v461_v40 = vrot.slane %v460_v38, 1  ;;  %v500_v44 = vadd.f32 %v499_v41, %v498_v39 }
 0x118   : > { %v462_v43 = vadd.f32 %v461_v40, %v460_v38  ;;  %v501_v46 = vrot.slane %v500_v44, 1 }
 0x11a   : > { %v463_v45 = vadd.f32 %v462_v43, %v441_v42  ;;  %v502_v48 = vadd.f32 %v501_v46, %v500_v44 }
 0x11c   : > { %464 = vst [vmem:[#allocation2] sm:$0x1] %v463_v45  ;;  %v503_v49 = vadd.f32 %v502_v48, %v465_v47 }
 0x11e   : > { %504 = vst [vmem:[#allocation3] sm:$0x1] %v503_v49 }
 0x11f PF: > { %p505_p6 = scmp.eq.s32.totalorder %s803_s15, 1 }
 0x120   : > { %v516_v57 = vld [vmem:[%s1096_s2] sm:$0x1] (%p505_p6) }
 0x121   : > { %509 = sbr.rel (!%p505_p6) target bundleno = 318 (0x13e), region = 48  ;;  %v521_v60 = vld [vmem:[%s1097_s3] sm:$0x1] (%p505_p6) }
 0x123   : > { %v510_v50 = vld [vmem:[#allocation2] sm:$0x1] (%p505_p6) }
 0x124   : > { %v511_v52 = vmul.f32 (%p505_p6), 0.0078125, %v510_v50 }
 0x125   : > { %v512_v51 = vld [vmem:[#allocation3] sm:$0x1] (%p505_p6) }
 0x126   : > { %v513_v53 = vmul.f32 (%p505_p6), 0.0078125, %v512_v51  ;;  %v514_v54 = vmul.f32 (%p505_p6), %v511_v52, %v511_v52 }
 0x128   : > { %v515_v55 = vsub.f32 %v513_v53, %v514_v54 }
 0x12a   : > { %v517_v56 = vadd.f32 1e-05, %v515_v55 }
 0x12c   : > { %787 = vrsqrt.f32 %v517_v56 }
 0x136   : > { %v788_v58 = vpop.eup %787 }
 0x137   : > { %v519_v59 = vmul.f32 %v788_v58, %v516_v57 }
 0x139   : > { %520 = vst [vmem:[#allocation4] sm:$0x1] %v519_v59  ;;  %v522_v61 = vmul.f32 %v519_v59, %v511_v52 }
 0x13b   : > { %v523_v62 = vsub.f32 %v521_v60, %v522_v61 }
 0x13d   : > { %524 = vst [vmem:[#allocation5] sm:$0x1] %v523_v62 }
 0x13e PF: > { %p701_p7 = scmp.ne.s32.totalorder %s803_s15, 1 }
 0x140   : > { %527 = sbr.rel (%p701_p7) target bundleno = 337 (0x151), region = 52  ;;  %v702_v63 = vld [vmem:[#allocation4] ss:$0 sm:$0xff] (!%p701_p7) }
 0x141   : > { %v535_v1 = vmul.f32 (!%p701_p7), %v702_v63, %v934_v21  ;;  %v536_v2 = vmul.f32 (!%p701_p7), %v930_v19, %v702_v63  ;;  %v537_v3 = vmul.f32 (!%p701_p7), %v702_v63, %v942_v25  ;;  %v538_v4 = vmul.f32 (!%p701_p7), %v938_v23, %v702_v63 }
 0x142   : > { %v539_v5 = vmul.f32 (!%p701_p7), %v702_v63, %v950_v29  ;;  %v540_v6 = vmul.f32 (!%p701_p7), %v946_v27, %v702_v63  ;;  %v541_v7 = vmul.f32 (!%p701_p7), %v702_v63, %v958_v33  ;;  %v542_v8 = vmul.f32 (!%p701_p7), %v954_v31, %v702_v63 }
 0x143   : > { %v543_v31 = vmul.f32 (!%p701_p7), %v702_v63, %v936_v22  ;;  %v544_v33 = vmul.f32 (!%p701_p7), %v932_v20, %v702_v63  ;;  %v545_v35 = vmul.f32 (!%p701_p7), %v702_v63, %v944_v26  ;;  %v546_v36 = vmul.f32 (!%p701_p7), %v940_v24, %v702_v63 }
 0x144   : > { %v703_v0 = vld [vmem:[#allocation5] ss:$0 sm:$0xff] (!%p701_p7)  ;;  %v547_v20 = vmul.f32 (!%p701_p7), %v702_v63, %v952_v30  ;;  %v548_v22 = vmul.f32 (!%p701_p7), %v948_v28, %v702_v63  ;;  %v549_v24 = vmul.f32 (!%p701_p7), %v702_v63, %v960_v34  ;;  %v550_v26 = vmul.f32 (!%p701_p7), %v956_v32, %v702_v63 }
 0x145   : > { %v558_v9 = vadd.f32 (!%p701_p7), %v703_v0, %v535_v1  ;;  %v559_v10 = vadd.f32 (!%p701_p7), %v703_v0, %v536_v2  ;;  %v560_v11 = vadd.f32 (!%p701_p7), %v703_v0, %v537_v3  ;;  %v561_v12 = vadd.f32 (!%p701_p7), %v703_v0, %v538_v4 }
 0x146   : > { %v562_v13 = vadd.f32 (!%p701_p7), %v703_v0, %v539_v5  ;;  %v563_v21 = vadd.f32 (!%p701_p7), %v703_v0, %v540_v6  ;;  %v564_v14 = vadd.f32 (!%p701_p7), %v703_v0, %v541_v7  ;;  %v565_v19 = vadd.f32 (!%p701_p7), %v703_v0, %v542_v8 }
 0x147   : > { %v574_v15 = vmax.f32 %v558_v9, 0.0  ;;  %v575_v25 = vmax.f32 %v559_v10, 0.0  ;;  %v576_v16 = vmax.f32 %v560_v11, 0.0  ;;  %v577_v23 = vmax.f32 %v561_v12, 0.0 }
 0x148   : > { %v578_v17 = vmax.f32 %v562_v13, 0.0  ;;  %v579_v29 = vmax.f32 %v563_v21, 0.0  ;;  %v580_v18 = vmax.f32 %v564_v14, 0.0  ;;  %v581_v27 = vmax.f32 %v565_v19, 0.0 }
 0x149   : > { %590 = vst [vmem:[%s1098_s4] sm:$0xff] %v574_v15  ;;  %591 = vst [vmem:[%s1098_s4 + $0x8] sm:$0xff] %v575_v25  ;;  %v566_v37 = vadd.f32 %v703_v0, %v543_v31  ;;  %v567_v38 = vadd.f32 %v703_v0, %v544_v33  ;;  %v568_v39 = vadd.f32 %v703_v0, %v545_v35 }
 0x14a   : > { %592 = vst [vmem:[%s1098_s4 + $0x10] sm:$0xff] %v576_v16  ;;  %593 = vst [vmem:[%s1098_s4 + $0x18] sm:$0xff] %v577_v23  ;;  %v569_v40 = vadd.f32 %v703_v0, %v546_v36  ;;  %v570_v41 = vadd.f32 %v703_v0, %v547_v20  ;;  %v571_v42 = vadd.f32 %v703_v0, %v548_v22 }
 0x14b   : > { %594 = vst [vmem:[%s1098_s4 + $0x20] sm:$0xff] %v578_v17  ;;  %595 = vst [vmem:[%s1098_s4 + $0x28] sm:$0xff] %v579_v29  ;;  %v572_v43 = vadd.f32 %v703_v0, %v549_v24  ;;  %v573_v44 = vadd.f32 %v703_v0, %v550_v26  ;;  %v582_v45 = vmax.f32 %v566_v37, 0.0  ;;  %v583_v46 = vmax.f32 %v567_v38, 0.0 }
 0x14c   : > { %596 = vst [vmem:[%s1098_s4 + $0x30] sm:$0xff] %v580_v18  ;;  %597 = vst [vmem:[%s1098_s4 + $0x38] sm:$0xff] %v581_v27  ;;  %v584_v47 = vmax.f32 %v568_v39, 0.0  ;;  %v585_v48 = vmax.f32 %v569_v40, 0.0  ;;  %v586_v49 = vmax.f32 %v570_v41, 0.0  ;;  %v587_v30 = vmax.f32 %v571_v42, 0.0 }
 0x14d   : > { %v588_v50 = vmax.f32 %v572_v43, 0.0  ;;  %v589_v28 = vmax.f32 %v573_v44, 0.0  ;;  %598 = vst [vmem:[%s1098_s4 + $0x40] sm:$0xff] %v582_v45  ;;  %599 = vst [vmem:[%s1098_s4 + $0x48] sm:$0xff] %v583_v46 }
 0x14e   : > { %600 = vst [vmem:[%s1098_s4 + $0x50] sm:$0xff] %v584_v47  ;;  %601 = vst [vmem:[%s1098_s4 + $0x58] sm:$0xff] %v585_v48 }
 0x14f   : > { %602 = vst [vmem:[%s1098_s4 + $0x60] sm:$0xff] %v586_v49  ;;  %603 = vst [vmem:[%s1098_s4 + $0x68] sm:$0xff] %v587_v30 }
 0x150   : > { %604 = vst [vmem:[%s1098_s4 + $0x70] sm:$0xff] %v588_v50  ;;  %605 = vst [vmem:[%s1098_s4 + $0x78] sm:$0xff] %v589_v28 }
 0x151 PF: > { %s14_s17 = sadd.s32 1, %s811_s17   ;;  %s1099_s15 = smov %s807_s16 }
 0x152   : > { %p11_p8 = scmp.ge.s32.totalorder %s14_s17, 4   ;;  %s1100_s16 = smov %s1102_s18 }
 0x154   :  { %13 = sbr.rel (!%p11_p8) target bundleno = 2 (0x2), region = 82 }

// kernel: stem_block_forward.8
= control target key start
LH: loop header
LB: loop body
LE: loop exit
PB: predicated region body
PF: predicated region fallthrough
CT: control target
= control target key end

     0   :  { %s653_s15 = smov 0   ;;  %s655_s16 = smov 0   ;;  %s810_s0 = inlined_call_operand.vmem [shape: f32[32,144], index: 0, kind: input, shape index: {}]   ;;  %s811_s1 = inlined_call_operand.vmem [shape: f32[144,128], index: 1, kind: input, shape index: {}]   ;;  %s812_s2 = inlined_call_operand.vmem [shape: f32[1,128], index: 2, kind: input, shape index: {}]   ;;  %s813_s3 = inlined_call_operand.vmem [shape: f32[1,128], index: 3, kind: input, shape index: {}]   ;;  %s814_s4 = inlined_call_operand.vmem [shape: f32[32,128], index: 4, kind: output, shape index: {}]  }
   0x1   :  { %s657_s17 = smov 0  }
   0x2 LB: > { %s26_s18 = sadd.s32 1, %s620_s16  ;;  %p512_p0 = scmp.ge.s32.totalorder %s624_s17, 1  ;;  %s624_s17 = sphi %s657_s17, %s14_s17   ;;  %s620_s16 = sphi %s655_s16, %s816_s16   ;;  %s616_s15 = sphi %s653_s15, %s815_s15  }
   0x3   : > { %p28_p1 = scmp.ge.s32.totalorder %s26_s18, 2  ;;  %p178_p2 = scmp.lt.s32.totalorder %s624_s17, 3 }
   0x5   : > { %s818_s18 = smov (%p28_p1, %s26_s18), 0  ;;  %p179_p3 = pnand %p512_p0, %p178_p2 }
   0x6   : > { %v229_v0 = vld [vmem:[%s811_s1] sm:$0xff] (!%p179_p3)  ;;  %v230_v1 = vld [vmem:[%s811_s1 + $0x8] sm:$0xff] (!%p179_p3)  ;;  %v231_v2 = vld [vmem:[%s811_s1 + $0x10] sm:$0xff] (!%p179_p3)  ;;  %v626_v3 = vmov (!%p179_p3), 0.0|0.0   ;;  %vm247_vm0 = vcmask (!%p179_p3), 130048   ;;  %p345_p4 = scmp.eq.s32.totalorder (!%p179_p3), %s616_s15, 0 }
   0x7   : > { %182 = sbr.rel (%p179_p3) target bundleno = 329 (0x149), region = 36  ;;  %529 = vmatprep.subr.bf16.mxu0 (!%p179_p3), %v626_v3  ;;  %556 = vmatprep.subr.bf16.mxu1 (!%p179_p3), %v626_v3  ;;  %v530_v4 = vpack.c.bf16 (!%p179_p3), %v230_v1, %v229_v0  ;;  %v232_v5 = vld [vmem:[%s811_s1 + $0x18] sm:$0xff] (!%p179_p3)  ;;  %v233_v7 = vld [vmem:[%s811_s1 + $0x20] sm:$0xff] (!%p179_p3)  ;;  %v234_v8 = vld [vmem:[%s811_s1 + $0x28] sm:$0xff] (!%p179_p3) }
   0x8   : > { %v533_v6 = vpack.c.bf16 (!%p179_p3), %v232_v5, %v231_v2  ;;  %v222_v9 = vld [vmem:[%s810_s0 + $0x8] sm:$0xff] (!%p179_p3)  ;;  %v536_v11 = vpack.c.bf16 (!%p179_p3), %v234_v8, %v233_v7  ;;  %v235_v12 = vld [vmem:[%s811_s1 + $0x30] sm:$0xff] (!%p179_p3)  ;;  %v236_v13 = vld [vmem:[%s811_s1 + $0x38] sm:$0xff] (!%p179_p3) }
   0x9   : > { %531 = vmatpush1.bf16.msra.mxu0 (!%p179_p3), %v530_v4  ;;  %565 = vmatpush1.bf16.msra.mxu1 (!%p179_p3), %v530_v4  ;;  %v226_v10 = vld [vmem:[%s810_s0 + $0x28] sm:$0xff] (!%p179_p3)  ;;  %v539_v14 = vpack.c.bf16 (!%p179_p3), %v236_v13, %v235_v12  ;;  %v237_v15 = vld [vmem:[%s811_s1 + $0x40] sm:$0xff] (!%p179_p3)  ;;  %v239_v18 = vld [vmem:[%s811_s1 + $0x50] sm:$0xff] (!%p179_p3) }
   0xa   : > { %532 = vmatprep.subr.bf16.mxu0 (!%p179_p3), %v626_v3  ;;  %557 = vmatprep.subr.bf16.mxu1 (!%p179_p3), %v626_v3  ;;  %v238_v16 = vld [vmem:[%s811_s1 + $0x48] sm:$0xff] (!%p179_p3)  ;;  %v240_v19 = vld [vmem:[%s811_s1 + $0x58] sm:$0xff] (!%p179_p3)  ;;  %v241_v21 = vld [vmem:[%s811_s1 + $0x60] sm:$0xff] (!%p179_p3) }
   0xb   : > { %513 = vmatprep.mubr.msk.f32.mxu0 (!%p179_p3), %vm247_vm0, %v222_v9  ;;  %515 = vmatprep.mubr.msk.f32.mxu1 (!%p179_p3), %vm247_vm0, %v226_v10  ;;  %v542_v17 = vpack.c.bf16 (!%p179_p3), %v238_v16, %v237_v15  ;;  %v545_v20 = vpack.c.bf16 (!%p179_p3), %v240_v19, %v239_v18  ;;  %v242_v22 = vld [vmem:[%s811_s1 + $0x68] sm:$0xff] (!%p179_p3)  ;;  %v243_v24 = vld [vmem:[%s811_s1 + $0x70] sm:$0xff] (!%p179_p3)  ;;  %v244_v25 = vld [vmem:[%s811_s1 + $0x78] sm:$0xff] (!%p179_p3) }
   0xc   : > { %v548_v23 = vpack.c.bf16 (!%p179_p3), %v242_v22, %v241_v21  ;;  %v551_v26 = vpack.c.bf16 (!%p179_p3), %v244_v25, %v243_v24  ;;  %v245_v27 = vld [vmem:[%s811_s1 + $0x80] sm:$0xff] (!%p179_p3)  ;;  %v246_v28 = vld [vmem:[%s811_s1 + $0x88] sm:$0xff] (!%p179_p3)  ;;  %v224_v32 = vld [vmem:[%s810_s0 + $0x18] sm:$0xff] (!%p179_p3) }
   0xd   : > { %534 = vmatpush1.bf16.msra.mxu0 (!%p179_p3), %v533_v6  ;;  %566 = vmatpush1.bf16.msra.mxu1 (!%p179_p3), %v533_v6  ;;  %v554_v29 = vpack.c.bf16 (!%p179_p3), %v246_v28, %v245_v27  ;;  %v221_v30 = vld [vmem:[%s810_s0] sm:$0xff] (!%p179_p3)  ;;  %v228_v33 = vld [vmem:[%s810_s0 + $0x38] sm:$0xff] (!%p179_p3)  ;;  %v223_v34 = vld [vmem:[%s810_s0 + $0x10] sm:$0xff] (!%p179_p3) }
   0xe   : > { %535 = vmatprep.subr.bf16.mxu0 %v626_v3  ;;  %558 = vmatprep.subr.bf16.mxu1 %v626_v3  ;;  %v225_v31 = vld [vmem:[%s810_s0 + $0x20] sm:$0xff]  ;;  %v227_v35 = vld [vmem:[%s810_s0 + $0x30] sm:$0xff]  ;;  %v627_v44 = vmov (%p345_p4), 0.0  }
   0xf   : > { %351 = vst [vmem:[#allocation2] sm:$0x1] (%p345_p4), %v627_v44  ;;  %352 = vst [vmem:[#allocation3] sm:$0x1] (%p345_p4), %v627_v44 }
  0x11   : > { %537 = vmatpush1.bf16.msra.mxu0 %v536_v11  ;;  %567 = vmatpush1.bf16.msra.mxu1 %v536_v11 }
  0x12   : > { %538 = vmatprep.subr.bf16.mxu0 %v626_v3  ;;  %559 = vmatprep.subr.bf16.mxu1 %v626_v3 }
  0x15   : > { %540 = vmatpush1.bf16.msra.mxu0 %v539_v14  ;;  %568 = vmatpush1.bf16.msra.mxu1 %v539_v14 }
  0x16   : > { %541 = vmatprep.subr.bf16.mxu0 %v626_v3  ;;  %560 = vmatprep.subr.bf16.mxu1 %v626_v3 }
  0x19   : > { %543 = vmatpush1.bf16.msra.mxu0 %v542_v17  ;;  %569 = vmatpush1.bf16.msra.mxu1 %v542_v17 }
  0x1a   : > { %544 = vmatprep.subr.bf16.mxu0 %v626_v3  ;;  %561 = vmatprep.subr.bf16.mxu1 %v626_v3 }
  0x1d   : > { %546 = vmatpush1.bf16.msra.mxu0 %v545_v20  ;;  %570 = vmatpush1.bf16.msra.mxu1 %v545_v20 }
  0x1e   : > { %547 = vmatprep.subr.bf16.mxu0 %v626_v3  ;;  %562 = vmatprep.subr.bf16.mxu1 %v626_v3 }
  0x21   : > { %549 = vmatpush1.bf16.msra.mxu0 %v548_v23  ;;  %571 = vmatpush1.bf16.msra.mxu1 %v548_v23 }
  0x22   : > { %550 = vmatprep.subr.bf16.mxu0 %v626_v3  ;;  %563 = vmatprep.subr.bf16.mxu1 %v626_v3 }
  0x25   : > { %552 = vmatpush1.bf16.msra.mxu0 %v551_v26  ;;  %572 = vmatpush1.bf16.msra.mxu1 %v551_v26 }
  0x26   : > { %553 = vmatprep.subr.bf16.mxu0 %v626_v3  ;;  %564 = vmatprep.subr.bf16.mxu1 %v626_v3 }
  0x29   : > { %555 = vmatpush1.bf16.msra.mxu0 %v554_v29  ;;  %573 = vmatpush1.bf16.msra.mxu1 %v554_v29 }
  0x2c   : > { %325 = vmatmul.mubr.f32.vlgmr.msra.gmra.mrb[0].mxu0 %v221_v30  ;;  %335 = vmatmul.mubr.f32.vlgmr.msra.gmra.mrb[0].mxu1 %v225_v31 }
  0x2d   : > { %514 = vmatprep.mubr.msk.f32.mxu0 %vm247_vm0, %v224_v32  ;;  %516 = vmatprep.mubr.msk.f32.mxu1 %vm247_vm0, %v228_v33 }
  0x30   : > { %330 = vmatmul.mubr.f32.gmra.mrb[2].mxu0 %v223_v34  ;;  %340 = vmatmul.mubr.f32.gmra.mrb[2].mxu1 %v227_v35 }
  0xfe   : > { %350 = sbr.rel (!%p345_p4) target bundleno = 261 (0x105), region = 40 }
  0xff   : > { %v756_v36 = vpop.f32.mrb[0].mxu0  ;;  %v758_v37 = vpop.f32.mrb[0].mxu1 }
 0x100   : > { %v328_v38 = vpop.f32.mrb[1].mxu0  ;;  %v338_v39 = vpop.f32.mrb[1].mxu1 }
 0x103   : > { %v760_v40 = vpop.f32.mrb[2].mxu0  ;;  %v762_v41 = vpop.f32.mrb[2].mxu1 }
 0x104   : > { %v333_v42 = vpop.f32.mrb[3].mxu0  ;;  %v343_v43 = vpop.f32.mrb[3].mxu1 }
 0x105 PF: > { %p518_p5 = scmp.ne.s32.totalorder %s616_s15, 0 }
 0x106   : > { %v357_v45 = vadd.f32 (!%p518_p5), %v760_v40, %v756_v36  ;;  %v369_v46 = vmul.f32 (!%p518_p5), %v756_v36, %v756_v36  ;;  %v370_v47 = vmul.f32 (!%p518_p5), %v760_v40, %v760_v40  ;;  %v371_v48 = vmul.f32 (!%p518_p5), %v758_v37, %v758_v37  ;;  %v356_v0 = vld [vmem:[#allocation2] sm:$0x1] (!%p518_p5)  ;;  %v368_v3 = vld [vmem:[#allocation3] sm:$0x1] (!%p518_p5) }
 0x107   : > { %355 = sbr.rel (%p518_p5) target bundleno = 285 (0x11d), region = 44  ;;  %v372_v50 = vmul.f32 (!%p518_p5), %v762_v41, %v762_v41 }
 0x108   : > { %v358_v49 = vadd.f32 (!%p518_p5), %v357_v45, %v758_v37  ;;  %v373_v51 = vadd.f32 (!%p518_p5), %v370_v47, %v369_v46 }
 0x10a   : > { %v359_v52 = vadd.f32 (!%p518_p5), %v358_v49, %v762_v41  ;;  %v374_v53 = vadd.f32 (!%p518_p5), %v373_v51, %v371_v48 }
 0x10c   : > { %v360_v54 = vrot.slane (!%p518_p5), %v359_v52, 4  ;;  %v375_v55 = vadd.f32 (!%p518_p5), %v374_v53, %v372_v50 }
 0x10e   : > { %v361_v56 = vadd.f32 %v360_v54, %v359_v52  ;;  %v376_v57 = vrot.slane %v375_v55, 4 }
 0x110   : > { %v362_v58 = vrot.slane %v361_v56, 2  ;;  %v377_v59 = vadd.f32 %v376_v57, %v375_v55 }
 0x112   : > { %v363_v60 = vadd.f32 %v362_v58, %v361_v56  ;;  %v378_v61 = vrot.slane %v377_v59, 2 }
 0x114   : > { %v364_v62 = vrot.slane %v363_v60, 1  ;;  %v379_v63 = vadd.f32 %v378_v61, %v377_v59 }
 0x116   : > { %v365_v1 = vadd.f32 %v364_v62, %v363_v60  ;;  %v380_v2 = vrot.slane %v379_v63, 1 }
 0x118   : > { %v366_v4 = vadd.f32 %v365_v1, %v356_v0  ;;  %v381_v5 = vadd.f32 %v380_v2, %v379_v63 }
 0x11a   : > { %367 = vst [vmem:[#allocation2] sm:$0x1] %v366_v4  ;;  %v382_v6 = vadd.f32 %v381_v5, %v368_v3 }
 0x11c   : > { %383 = vst [vmem:[#allocation3] sm:$0x1] %v382_v6 }
 0x11d PF: > { %p384_p6 = scmp.eq.s32.totalorder %s616_s15, 1 }
 0x11e   : > { %v395_v14 = vld [vmem:[%s812_s2] sm:$0x1] (%p384_p6) }
 0x11f   : > { %388 = sbr.rel (!%p384_p6) target bundleno = 316 (0x13c), region = 48  ;;  %v400_v17 = vld [vmem:[%s813_s3] sm:$0x1] (%p384_p6) }
 0x121   : > { %v389_v7 = vld [vmem:[#allocation2] sm:$0x1] (%p384_p6) }
 0x122   : > { %v390_v9 = vmul.f32 (%p384_p6), 0.03125, %v389_v7 }
 0x123   : > { %v391_v8 = vld [vmem:[#allocation3] sm:$0x1] (%p384_p6) }
 0x124   : > { %v392_v10 = vmul.f32 (%p384_p6), 0.03125, %v391_v8  ;;  %v393_v11 = vmul.f32 (%p384_p6), %v390_v9, %v390_v9 }
 0x126   : > { %v394_v12 = vsub.f32 %v392_v10, %v393_v11 }
 0x128   : > { %v396_v13 = vadd.f32 1e-05, %v394_v12 }
 0x12a   : > { %600 = vrsqrt.f32 %v396_v13 }
 0x134   : > { %v601_v15 = vpop.eup %600 }
 0x135   : > { %v398_v16 = vmul.f32 %v601_v15, %v395_v14 }
 0x137   : > { %399 = vst [vmem:[#allocation4] sm:$0x1] %v398_v16  ;;  %v401_v18 = vmul.f32 %v398_v16, %v390_v9 }
 0x139   : > { %v402_v19 = vsub.f32 %v400_v17, %v401_v18 }
 0x13b   : > { %403 = vst [vmem:[#allocation5] sm:$0x1] %v402_v19 }
 0x13c PF: > { %p520_p7 = scmp.ne.s32.totalorder %s616_s15, 1 }
 0x13e   : > { %406 = sbr.rel (%p520_p7) target bundleno = 329 (0x149), region = 52  ;;  %v521_v20 = vld [vmem:[#allocation4] ss:$0 sm:$0xff] (!%p520_p7) }
 0x13f   : > { %v414_v22 = vmul.f32 (!%p520_p7), %v521_v20, %v756_v36  ;;  %v415_v23 = vmul.f32 (!%p520_p7), %v521_v20, %v760_v40  ;;  %v416_v24 = vmul.f32 (!%p520_p7), %v521_v20, %v758_v37  ;;  %v417_v25 = vmul.f32 (!%p520_p7), %v521_v20, %v762_v41 }
 0x142   : > { %v522_v21 = vld [vmem:[#allocation5] ss:$0 sm:$0xff] (!%p520_p7) }
 0x143   : > { %v425_v26 = vadd.f32 (!%p520_p7), %v522_v21, %v414_v22  ;;  %v426_v27 = vadd.f32 (!%p520_p7), %v522_v21, %v415_v23  ;;  %v427_v28 = vadd.f32 (!%p520_p7), %v522_v21, %v416_v24  ;;  %v428_v29 = vadd.f32 (!%p520_p7), %v522_v21, %v417_v25 }
 0x145   : > { %v429_v30 = vmax.f32 %v425_v26, 0.0  ;;  %v430_v31 = vmax.f32 %v426_v27, 0.0  ;;  %v431_v32 = vmax.f32 %v427_v28, 0.0  ;;  %v432_v33 = vmax.f32 %v428_v29, 0.0 }
 0x147   : > { %433 = vst [vmem:[%s814_s4] sm:$0xff] %v429_v30  ;;  %434 = vst [vmem:[%s814_s4 + $0x8] sm:$0xff] %v430_v31 }
 0x148   : > { %435 = vst [vmem:[%s814_s4 + $0x10] sm:$0xff] %v431_v32  ;;  %436 = vst [vmem:[%s814_s4 + $0x18] sm:$0xff] %v432_v33 }
 0x149 PF: > { %s14_s17 = sadd.s32 1, %s624_s17   ;;  %s815_s15 = smov %s620_s16 }
 0x14a   : > { %p11_p8 = scmp.ge.s32.totalorder %s14_s17, 4   ;;  %s816_s16 = smov %s818_s18 }
 0x14c   :  { %13 = sbr.rel (!%p11_p8) target bundleno = 2 (0x2), region = 82 }

// kernel: stem_block_forward.9
= control target key start
LH: loop header
LB: loop body
LE: loop exit
PB: predicated region body
PF: predicated region fallthrough
CT: control target
= control target key end

     0   :  { %9 = vsyncpa [#allocation7], 0  ;;  %s1121_s0 = inlined_call_operand.vmem [shape: f32[32,288], index: 0, kind: input, shape index: {}]   ;;  %s1122_s1 = inlined_call_operand.vmem [shape: f32[288,128], index: 1, kind: input, shape index: {}]   ;;  %s1123_s2 = inlined_call_operand.vmem [shape: f32[1,128], index: 2, kind: input, shape index: {}]   ;;  %s1124_s3 = inlined_call_operand.vmem [shape: f32[1,128], index: 3, kind: input, shape index: {}]   ;;  %s1125_s4 = inlined_call_operand.hbm [shape: f32[32,128], index: 4, kind: output, shape index: {}]  }
   0x1   :  { %11 = vsyncpa [#allocation7 + $0x1], 0  ;;  %s879_s15 = smov 0   ;;  %s881_s16 = smov 0  }
   0x2   :  { %s883_s17 = smov 0  }
   0x3 LB: > { %s628_s18 = sadd.s32 4294967295, %s848_s17   ;;  %s629_s19 = sadd.s32 4294967294, %s848_s17   ;;  %s848_s17 = sphi %s883_s17, %s17_s17   ;;  %s844_s16 = sphi %s881_s16, %s1128_s16   ;;  %s840_s15 = sphi %s879_s15, %s1127_s15  }
   0x4   : > { %s29_s20 = sadd.s32 1, %s844_s16  ;;  %p632_p0 = scmp.ge.s32.totalorder %s848_s17, 1 }
   0x5   : > { %p31_p1 = scmp.ge.s32.totalorder %s29_s20, 2  ;;  %p181_p2 = scmp.lt.s32.totalorder %s848_s17, 3 }
   0x7   : > { %s1130_s20 = smov (%p31_p1, %s29_s20), 0  ;;  %p182_p3 = pnand %p632_p0, %p181_p2 }
   0x8   : > { %v245_v0 = vld [vmem:[%s1122_s1 + $0x80] sm:$0xff] (!%p182_p3)  ;;  %v246_v1 = vld [vmem:[%s1122_s1 + $0x88] sm:$0xff] (!%p182_p3)  ;;  %v247_v5 = vld [vmem:[%s1122_s1 + $0x90] sm:$0xff] (!%p182_p3)  ;;  %vm265_vm0 = vcmask (!%p182_p3), 261120   ;;  %p448_p4 = scmp.eq.s32.totalorder (!%p182_p3), %s840_s15, 0 }
   0x9   : > { %185 = sbr.rel (%p182_p3) target bundleno = 363 (0x16b), region = 36  ;;  %v229_v2 = vld [vmem:[%s1122_s1] sm:$0xff] (!%p182_p3)  ;;  %v715_v3 = vpack.c.bf16 (!%p182_p3), %v246_v1, %v245_v0  ;;  %v230_v4 = vld [vmem:[%s1122_s1 + $0x8] sm:$0xff] (!%p182_p3)  ;;  %v248_v6 = vld [vmem:[%s1122_s1 + $0x98] sm:$0xff] (!%p182_p3) }
   0xa   : > { %v717_v7 = vpack.c.bf16 (!%p182_p3), %v230_v4, %v229_v2  ;;  %v719_v8 = vpack.c.bf16 (!%p182_p3), %v248_v6, %v247_v5  ;;  %v231_v9 = vld [vmem:[%s1122_s1 + $0x10] sm:$0xff] (!%p182_p3)  ;;  %v232_v10 = vld [vmem:[%s1122_s1 + $0x18] sm:$0xff] (!%p182_p3)  ;;  %v249_v11 = vld [vmem:[%s1122_s1 + $0xa0] sm:$0xff] (!%p182_p3) }
   0xb   : > { %716 = vmatprep.subr.bf16.mxu0 (!%p182_p3), %v715_v3  ;;  %v250_v12 = vld [vmem:[%s1122_s1 + $0xa8] sm:$0xff] (!%p182_p3)  ;;  %v721_v13 = vpack.c.bf16 (!%p182_p3), %v232_v10, %v231_v9  ;;  %v233_v15 = vld [vmem:[%s1122_s1 + $0x20] sm:$0xff] (!%p182_p3)  ;;  %v251_v17 = vld [vmem:[%s1122_s1 + $0xb0] sm:$0xff] (!%p182_p3) }
   0xc   : > { %718 = vmatpush3.bf16.msra.mxu0 (!%p182_p3), %v717_v7  ;;  %v723_v14 = vpack.c.bf16 (!%p182_p3), %v250_v12, %v249_v11  ;;  %v234_v16 = vld [vmem:[%s1122_s1 + $0x28] sm:$0xff] (!%p182_p3)  ;;  %v252_v18 = vld [vmem:[%s1122_s1 + $0xb8] sm:$0xff] (!%p182_p3)  ;;  %v235_v20 = vld [vmem:[%s1122_s1 + $0x30] sm:$0xff] (!%p182_p3) }
   0xd   : > { %720 = vmatprep.subr.bf16.mxu0 (!%p182_p3), %v719_v8  ;;  %v725_v19 = vpack.c.bf16 (!%p182_p3), %v234_v16, %v233_v15  ;;  %v727_v21 = vpack.c.bf16 (!%p182_p3), %v252_v18, %v251_v17  ;;  %v236_v22 = vld [vmem:[%s1122_s1 + $0x38] sm:$0xff] (!%p182_p3)  ;;  %v261_v23 = vld [vmem:[%s1122_s1 + $0x100] sm:$0xff] (!%p182_p3)  ;;  %v262_v24 = vld [vmem:[%s1122_s1 + $0x108] sm:$0xff] (!%p182_p3) }
   0xe   : > { %v253_v25 = vld [vmem:[%s1122_s1 + $0xc0] sm:$0xff] (!%p182_p3)  ;;  %v254_v26 = vld [vmem:[%s1122_s1 + $0xc8] sm:$0xff] (!%p182_p3)  ;;  %v747_v27 = vpack.c.bf16 (!%p182_p3), %v262_v24, %v261_v23  ;;  %v263_v28 = vld [vmem:[%s1122_s1 + $0x110] sm:$0xff] (!%p182_p3)  ;;  %v729_v30 = vpack.c.bf16 (!%p182_p3), %v236_v22, %v235_v20 }
   0xf   : > { %v264_v29 = vld [vmem:[%s1122_s1 + $0x118] sm:$0xff] (!%p182_p3)  ;;  %v218_v32 = vld [vmem:[%s1121_s0 + $0x8] sm:$0xff] (!%p182_p3)  ;;  %v219_v33 = vld [vmem:[%s1121_s0 + $0x10] sm:$0xff] (!%p182_p3)  ;;  %v731_v34 = vpack.c.bf16 (!%p182_p3), %v254_v26, %v253_v25 }
  0x10   : > { %722 = vmatpush3.bf16.msra.mxu0 %v721_v13  ;;  %748 = vmatprep.subr.bf16.mxu1 %v747_v27  ;;  %v751_v31 = vpack.c.bf16 %v264_v29, %v263_v28  ;;  %v237_v35 = vld [vmem:[%s1122_s1 + $0x40] sm:$0xff]  ;;  %v238_v36 = vld [vmem:[%s1122_s1 + $0x48] sm:$0xff]  ;;  %v255_v37 = vld [vmem:[%s1122_s1 + $0xd0] sm:$0xff]  ;;  %v850_v22 = vmov (%p448_p4), 0.0  }
  0x11   : > { %724 = vmatprep.subr.bf16.mxu0 %v723_v14  ;;  %750 = vmatpush3.bf16.msra.mxu1 %v747_v27  ;;  %v256_v38 = vld [vmem:[%s1122_s1 + $0xd8] sm:$0xff]  ;;  %v733_v39 = vpack.c.bf16 %v238_v36, %v237_v35  ;;  %v239_v41 = vld [vmem:[%s1122_s1 + $0x50] sm:$0xff]  ;;  %v222_v43 = vld [vmem:[%s1121_s0 + $0x28] sm:$0xff]  ;;  %454 = vst [vmem:[#allocation2] sm:$0x1] (%p448_p4), %v850_v22 }
  0x12   : > { %752 = vmatprep.subr.bf16.mxu1 %v751_v31  ;;  %342 = vmatprep.mubr.f32.mxu0 %v218_v32  ;;  %v735_v40 = vpack.c.bf16 %v256_v38, %v255_v37  ;;  %v240_v42 = vld [vmem:[%s1122_s1 + $0x58] sm:$0xff]  ;;  %v257_v44 = vld [vmem:[%s1122_s1 + $0xe0] sm:$0xff]  ;;  %v258_v45 = vld [vmem:[%s1122_s1 + $0xe8] sm:$0xff]  ;;  %455 = vst [vmem:[#allocation3] sm:$0x1] (%p448_p4), %v850_v22 }
  0x13   : > { %709 = vmatprep.mubr.msk.f32.mxu1 %vm265_vm0, %v219_v33  ;;  %v225_v46 = vld [vmem:[%s1121_s0 + $0x40] sm:$0xff]  ;;  %v737_v47 = vpack.c.bf16 %v240_v42, %v239_v41  ;;  %v739_v48 = vpack.c.bf16 %v258_v45, %v257_v44  ;;  %v242_v50 = vld [vmem:[%s1122_s1 + $0x68] sm:$0xff]  ;;  %v228_v51 = vld [vmem:[%s1121_s0 + $0x58] sm:$0xff] }
  0x14   : > { %726 = vmatpush3.bf16.msra.mxu0 %v725_v19  ;;  %v241_v49 = vld [vmem:[%s1122_s1 + $0x60] sm:$0xff]  ;;  %v259_v52 = vld [vmem:[%s1122_s1 + $0xf0] sm:$0xff]  ;;  %v260_v53 = vld [vmem:[%s1122_s1 + $0xf8] sm:$0xff] }
  0x15   : > { %728 = vmatprep.subr.bf16.mxu0 %v727_v21  ;;  %754 = vmatpush3.bf16.msra.mxu1 %v751_v31  ;;  %v741_v54 = vpack.c.bf16 %v242_v50, %v241_v49  ;;  %v743_v55 = vpack.c.bf16 %v260_v53, %v259_v52  ;;  %v243_v56 = vld [vmem:[%s1122_s1 + $0x70] sm:$0xff]  ;;  %v244_v57 = vld [vmem:[%s1122_s1 + $0x78] sm:$0xff]  ;;  %v217_v59 = vld [vmem:[%s1121_s0] sm:$0xff] }
  0x16   : > { %v745_v58 = vpack.c.bf16 %v244_v57, %v243_v56  ;;  %v221_v60 = vld [vmem:[%s1121_s0 + $0x20] sm:$0xff]  ;;  %v220_v61 = vld [vmem:[%s1121_s0 + $0x18] sm:$0xff]  ;;  %v223_v63 = vld [vmem:[%s1121_s0 + $0x30] sm:$0xff] }
  0x17   : > { %v224_v62 = vld [vmem:[%s1121_s0 + $0x38] sm:$0xff]  ;;  %v227_v0 = vld [vmem:[%s1121_s0 + $0x50] sm:$0xff]  ;;  %v226_v1 = vld [vmem:[%s1121_s0 + $0x48] sm:$0xff] }
  0x18   : > { %730 = vmatpush3.bf16.msra.mxu0 %v729_v30  ;;  %710 = vmatmul.mubr.msk.f32.vlgmr.msra.gmra.mrb[0].mxu1 %vm265_vm0, %v222_v43 }
  0x19   : > { %732 = vmatprep.subr.bf16.mxu0 %v731_v34  ;;  %712 = vmatprep.mubr.msk.f32.mxu1 %vm265_vm0, %v225_v46 }
  0x1c   : > { %734 = vmatpush3.bf16.msra.mxu0 %v733_v39  ;;  %713 = vmatmul.mubr.msk.f32.gmra.mrb[2].mxu1 %vm265_vm0, %v228_v51 }
  0x1d   : > { %736 = vmatprep.subr.bf16.mxu0 %v735_v40 }
  0x20   : > { %738 = vmatpush3.bf16.msra.mxu0 %v737_v47 }
  0x21   : > { %740 = vmatprep.subr.bf16.mxu0 %v739_v48 }
  0x24   : > { %742 = vmatpush3.bf16.msra.mxu0 %v741_v54 }
  0x25   : > { %744 = vmatprep.subr.bf16.mxu0 %v743_v55 }
  0x28   : > { %746 = vmatpush3.bf16.msra.mxu0 %v745_v58 }
  0x2b   : > { %343 = vmatmul.mubr.f32.vlgmr.msra.gmra.mrb[0].mxu0 %v217_v59 }
  0x2c   : > { %347 = vmatprep.mubr.f32.mxu0 %v221_v60 }
  0x2f   : > { %348 = vmatmul.mubr.f32.gmra.mrb[2].mxu0 %v220_v61 }
  0x30   : > { %352 = vmatprep.mubr.f32.mxu0 %v224_v62 }
  0x33   : > { %353 = vmatmul.mubr.f32.gmra.mrb[4].mxu0 %v223_v63 }
  0x34   : > { %357 = vmatprep.mubr.f32.mxu0 %v227_v0 }
  0x37   : > { %358 = vmatmul.mubr.f32.gmra.mrb[6].mxu0 %v226_v1 }
  0xeb   : > { %v711_v2 = vpop.f32.mrb[0].mxu1 }
  0xec   : > { %v429_v3 = vpop.f32.mrb[1].mxu1 }
  0xef   : > { %v714_v4 = vpop.f32.mrb[2].mxu1 }
  0xf0   : > { %v439_v5 = vpop.f32.mrb[3].mxu1 }
  0xfe   : > { %v681_v6 = vpop.f32.mrb[0].mxu0 }
  0xff   : > { %v682_v7 = vpop.f32.mrb[1].mxu0 }
 0x100   : > { %v683_v8 = vadd.f32 %v682_v7, %v681_v6 }
 0x102   : > { %v1050_v9 = vadd.f32 %v683_v8, %v429_v3  ;;  %v684_v10 = vpop.f32.mrb[2].mxu0 }
 0x103   : > { %v685_v11 = vpop.f32.mrb[3].mxu0 }
 0x104   : > { %v686_v12 = vadd.f32 %v685_v11, %v684_v10 }
 0x106   : > { %v1052_v13 = vadd.f32 %v711_v2, %v686_v12  ;;  %v687_v14 = vpop.f32.mrb[4].mxu0 }
 0x107   : > { %v688_v15 = vpop.f32.mrb[5].mxu0 }
 0x108   : > { %v689_v16 = vadd.f32 %v688_v15, %v687_v14  ;;  %453 = sbr.rel (!%p448_p4) target bundleno = 271 (0x10f), region = 40 }
 0x10a   : > { %v1054_v17 = vadd.f32 %v689_v16, %v439_v5  ;;  %v690_v18 = vpop.f32.mrb[6].mxu0 }
 0x10b   : > { %v691_v19 = vpop.f32.mrb[7].mxu0 }
 0x10c   : > { %v692_v20 = vadd.f32 %v691_v19, %v690_v18 }
 0x10e   : > { %v1056_v21 = vadd.f32 %v714_v4, %v692_v20 }
 0x10f PF: > { %p638_p5 = scmp.ne.s32.totalorder %s840_s15, 0 }
 0x110   : > { %v460_v23 = vadd.f32 (!%p638_p5), %v1052_v13, %v1050_v9  ;;  %v472_v24 = vmul.f32 (!%p638_p5), %v1050_v9, %v1050_v9  ;;  %v473_v25 = vmul.f32 (!%p638_p5), %v1052_v13, %v1052_v13  ;;  %v474_v26 = vmul.f32 (!%p638_p5), %v1054_v17, %v1054_v17  ;;  %v459_v42 = vld [vmem:[#allocation2] sm:$0x1] (!%p638_p5)  ;;  %v471_v45 = vld [vmem:[#allocation3] sm:$0x1] (!%p638_p5) }
 0x111   : > { %458 = sbr.rel (%p638_p5) target bundleno = 295 (0x127), region = 44  ;;  %v475_v28 = vmul.f32 (!%p638_p5), %v1056_v21, %v1056_v21 }
 0x112   : > { %v461_v27 = vadd.f32 (!%p638_p5), %v460_v23, %v1054_v17  ;;  %v476_v29 = vadd.f32 (!%p638_p5), %v473_v25, %v472_v24 }
 0x114   : > { %v462_v30 = vadd.f32 (!%p638_p5), %v461_v27, %v1056_v21  ;;  %v477_v31 = vadd.f32 (!%p638_p5), %v476_v29, %v474_v26 }
 0x116   : > { %v463_v32 = vrot.slane (!%p638_p5), %v462_v30, 4  ;;  %v478_v33 = vadd.f32 (!%p638_p5), %v477_v31, %v475_v28 }
 0x118   : > { %v464_v34 = vadd.f32 %v463_v32, %v462_v30  ;;  %v479_v35 = vrot.slane %v478_v33, 4 }
 0x11a   : > { %v465_v36 = vrot.slane %v464_v34, 2  ;;  %v480_v37 = vadd.f32 %v479_v35, %v478_v33 }
 0x11c   : > { %v466_v38 = vadd.f32 %v465_v36, %v464_v34  ;;  %v481_v39 = vrot.slane %v480_v37, 2 }
 0x11e   : > { %v467_v40 = vrot.slane %v466_v38, 1  ;;  %v482_v41 = vadd.f32 %v481_v39, %v480_v37 }
 0x120   : > { %v468_v43 = vadd.f32 %v467_v40, %v466_v38  ;;  %v483_v44 = vrot.slane %v482_v41, 1 }
 0x122   : > { %v469_v46 = vadd.f32 %v468_v43, %v459_v42  ;;  %v484_v47 = vadd.f32 %v483_v44, %v482_v41 }
 0x124   : > { %470 = vst [vmem:[#allocation2] sm:$0x1] %v469_v46  ;;  %v485_v48 = vadd.f32 %v484_v47, %v471_v45 }
 0x126   : > { %486 = vst [vmem:[#allocation3] sm:$0x1] %v485_v48 }
 0x127 PF: > { %p487_p6 = scmp.eq.s32.totalorder %s840_s15, 1 }
 0x128   : > { %v498_v56 = vld [vmem:[%s1123_s2] sm:$0x1] (%p487_p6) }
 0x129   : > { %491 = sbr.rel (!%p487_p6) target bundleno = 326 (0x146), region = 48  ;;  %v503_v59 = vld [vmem:[%s1124_s3] sm:$0x1] (%p487_p6) }
 0x12b   : > { %v492_v49 = vld [vmem:[#allocation2] sm:$0x1] (%p487_p6) }
 0x12c   : > { %v493_v51 = vmul.f32 (%p487_p6), 0.03125, %v492_v49 }
 0x12d   : > { %v494_v50 = vld [vmem:[#allocation3] sm:$0x1] (%p487_p6) }
 0x12e   : > { %v495_v52 = vmul.f32 (%p487_p6), 0.03125, %v494_v50  ;;  %v496_v53 = vmul.f32 (%p487_p6), %v493_v51, %v493_v51 }
 0x130   : > { %v497_v54 = vsub.f32 %v495_v52, %v496_v53 }
 0x132   : > { %v499_v55 = vadd.f32 1e-05, %v497_v54 }
 0x134   : > { %794 = vrsqrt.f32 %v499_v55 }
 0x13e   : > { %v795_v57 = vpop.eup %794 }
 0x13f   : > { %v501_v58 = vmul.f32 %v795_v57, %v498_v56 }
 0x141   : > { %502 = vst [vmem:[#allocation4] sm:$0x1] %v501_v58  ;;  %v504_v60 = vmul.f32 %v501_v58, %v493_v51 }
 0x143   : > { %v505_v61 = vsub.f32 %v503_v59, %v504_v60 }
 0x145   : > { %506 = vst [vmem:[#allocation5] sm:$0x1] %v505_v61 }
 0x146 PF: > { %p640_p7 = scmp.ne.s32.totalorder %s840_s15, 1 }
 0x148   : > { %509 = sbr.rel (%p640_p7) target bundleno = 339 (0x153), region = 52  ;;  %v641_v62 = vld [vmem:[#allocation4] ss:$0 sm:$0xff] (!%p640_p7) }
 0x149   : > { %v517_v0 = vmul.f32 (!%p640_p7), %v641_v62, %v1050_v9  ;;  %v518_v1 = vmul.f32 (!%p640_p7), %v641_v62, %v1052_v13  ;;  %v519_v2 = vmul.f32 (!%p640_p7), %v641_v62, %v1054_v17  ;;  %v520_v3 = vmul.f32 (!%p640_p7), %v641_v62, %v1056_v21 }
 0x14c   : > { %v642_v63 = vld [vmem:[#allocation5] ss:$0 sm:$0xff] (!%p640_p7) }
 0x14d   : > { %v528_v4 = vadd.f32 (!%p640_p7), %v642_v63, %v517_v0  ;;  %v529_v5 = vadd.f32 (!%p640_p7), %v642_v63, %v518_v1  ;;  %v530_v6 = vadd.f32 (!%p640_p7), %v642_v63, %v519_v2  ;;  %v531_v7 = vadd.f32 (!%p640_p7), %v642_v63, %v520_v3 }
 0x14f   : > { %v532_v8 = vmax.f32 %v528_v4, 0.0  ;;  %v533_v10 = vmax.f32 %v529_v5, 0.0  ;;  %v534_v11 = vmax.f32 %v530_v6, 0.0  ;;  %v535_v12 = vmax.f32 %v531_v7, 0.0 }
 0x151   : > { %536 = vst [vmem:[#allocation6] sm:$0xff] %v532_v8  ;;  %537 = vst [vmem:[#allocation6 + $0x8] sm:$0xff] %v533_v10 }
 0x152   : > { %538 = vst [vmem:[#allocation6 + $0x10] sm:$0xff] %v534_v11  ;;  %539 = vst [vmem:[#allocation6 + $0x18] sm:$0xff] %v535_v12 }
 0x153 PF: > { %p1087_p8 = scmp.eq.s32.totalorder %s628_s18, 1  ;;  %s851_s21 = smov [#allocation6]  }
 0x154   : > { %s555_s22 = sshll.u32 %s851_s21, 4  ;;  %s556_s22 = int_to_ptr.vmem [resolvable:$true] %s555_s22 }
 0x155   : > { %s796_s23 = scalar_lea.vmem %s556_s22, 512  ;;  %s802_s24 = scalar_lea.vmem %s556_s22, 1024 }
 0x156   : > { %p797_p9 = scmp.ne.s32.totalorder %s556_s22, %s796_s23  ;;  %p803_p12 = scmp.lt.s32.totalorder %s556_s22, %s556_s22 }
 0x157   : > { %p804_p13 = scmp.lt.s32.totalorder %s802_s24, %s796_s23 }
 0x158   : > { %p798_p10 = pnand %p797_p9, %p1087_p8 }
 0x159   : > { %p805_p0 = por %p804_p13, %p803_p12 }
 0x15a   : > { %p799_p11 = pneg %p798_p10 }
 0x15c   : > { %p806_p1 = pnand %p805_p0, %p799_p11 }
 0x15e   : > { %809 = shalt.err (!%p806_p1)
}
 0x15f   : > { %s810_s26 = scalar_lea.hbm %s1125_s4, 512 }
 0x160   : > { %p811_p2 = scmp.ne.s32.totalorder %s1125_s4, %s810_s26  ;;  %p816_p5 = scmp.lt.u32.totalorder %s810_s26, %s1125_s4 }
 0x162   : > { %p812_p3 = pnand %p811_p2, %p1087_p8 }
 0x164   : > { %p813_p4 = pneg %p812_p3 }
 0x166   : > { %p818_p6 = pnand %p816_p5, %p813_p4 }
 0x168   : > { %821 = shalt.err (!%p818_p6)
}
 0x169   : > { %s852_s5 = smov 128   ;;  %s853_s6 = smov 8  }
 0x16a   : > { %756 = dma.vmem_to_hbm [thread:$0]  (%p1087_p8), %s556_s22, 512, %s1125_s4, [#allocation7], %s852_s5, %s852_s5, %s853_s6  }
 0x16b PF: > { %p764_p7 = scmp.ge.s32.totalorder %s848_s17, 2  ;;  %p765_p9 = scmp.eq.s32.totalorder %s629_s19, 1 }
 0x16d   : > { %p760_p10 = pnand %p765_p9, %p764_p7 }
 0x16f   : > { %835 = dma.done.wait (!%p760_p10), [#allocation7], 512  }
 0x170   : > { %837 = vsyncadd (!%p760_p10), [#allocation7], 4294966784  ;;  %s17_s17 = sadd.s32 1, %s848_s17   ;;  %s1127_s15 = smov %s844_s16 }
 0x171   : > { %p14_p11 = scmp.ge.s32.totalorder %s17_s17, 4   ;;  %s1128_s16 = smov %s1130_s20 }
 0x173   :  { %16 = sbr.rel (!%p14_p11) target bundleno = 3 (0x3), region = 87 }
 0x17a   :  { %576 = vsyncpa [#allocation7], 1 }
 0x17b   :  { %578 = vsyncpa [#allocation7 + $0x1], 1 }

</bundles_post_ra>
